<compile_context>
chip_gen: v7x
topology: tpu7x:2x2x1
jax: 0.10.0
libtpu: 0.0.40
codegen_flags: <defaults>
</compile_context>

<pallas_src>
import functools

import jax
import jax.numpy as jnp
import numpy as np
from jax.experimental import pallas as pl
from jax.experimental.pallas import tpu as pltpu


def dwsep_kernel(x_ref, wdw_ref, bdw_ref, wpw_ref, bpw_ref, o_ref, *,
                 c_in, c_out, k, h_out, w_out):
    """One batch tile: x_ref (TB, C_in, H_pad, W_pad) -> o_ref (TB, C_out, H_out, W_out)."""
    x = x_ref[...]                      # (TB, C_in, H_pad, W_pad) f32, VMEM
    tb = x.shape[0]

    # --- depthwise KxK conv (groups == C_in): fully unrolled VPU FMAs over static
    #     shifted slices; per-tap scalar weights come from SMEM (scalar ALU / sregs).
    dw = []
    for c in range(c_in):
        acc = jnp.full((tb, h_out, w_out), bdw_ref[c], dtype=jnp.float32)
        for di in range(k):
            for dj in range(k):
                acc = acc + x[:, c, di:di + h_out, dj:dj + w_out] * wdw_ref[c, di, dj]
        dw.append(acc)

    # --- pointwise 1x1 conv: y[o] = b_pw[o] + sum_c w_pw[o, c] * dw[c]
    #     (VPU scalar FMAs; an MXU matmul would waste nearly all of its width here).
    for o in range(c_out):
        y = jnp.full((tb, h_out, w_out), bpw_ref[o], dtype=jnp.float32)
        for c in range(c_in):
            y = y + dw[c] * wpw_ref[o, c]
        o_ref[:, o:o + 1, :, :] = y[:, None, :, :].astype(o_ref.dtype)


def depthwise_separable_conv(x, params, *, padding=0, batch_tile=8):
    """x: (B, C_in, H, W) float32 NCHW.  Returns (B, C_out, H_out, W_out)."""
    B, C_in, H, W = x.shape
    w_dw, b_dw = params["w_dw"], params["b_dw"]          # (C_in, K, K), (C_in,)
    w_pw, b_pw = params["w_pw"], params["b_pw"]          # (C_out, C_in), (C_out,)
    C_out, K = w_pw.shape[0], w_dw.shape[-1]
    H_pad, W_pad = H + 2 * padding, W + 2 * padding
    H_out, W_out = H_pad - K + 1, W_pad - K + 1

    # Spatial zero-padding once in the wrapper (NCHW preserved).
    x_pad = jnp.pad(x, ((0, 0), (0, 0), (padding, padding), (padding, padding)))

    # Largest batch tile that divides B so every grid step is full.
    tb = max(1, min(batch_tile, B))
    while B % tb:
        tb -= 1

    kernel = functools.partial(dwsep_kernel, c_in=C_in, c_out=C_out, k=K,
                               h_out=H_out, w_out=W_out)
    smem = pl.BlockSpec(memory_space=pltpu.MemorySpace.SMEM)

    return pl.pallas_call(
        kernel,
        out_shape=jax.ShapeDtypeStruct((B, C_out, H_out, W_out), x.dtype),
        grid=(B // tb,),
        in_specs=[
            pl.BlockSpec((tb, C_in, H_pad, W_pad), lambda i: (i, 0, 0, 0)),  # x: VMEM, double-buffered
            smem,   # w_dw (C_in, K, K)
            smem,   # b_dw (C_in,)
            smem,   # w_pw (C_out, C_in)
            smem,   # b_pw (C_out,)
        ],
        out_specs=pl.BlockSpec((tb, C_out, H_out, W_out), lambda i: (i, 0, 0, 0)),
        compiler_params=pltpu.CompilerParams(dimension_semantics=("parallel",)),
    )(x_pad, w_dw, b_dw, w_pw, b_pw)


def init_params(key, in_channels, out_channels, kernel_size):
    """Mirror nn.Conv2d default init: U(-1/sqrt(fan_in), 1/sqrt(fan_in))."""
    k1, k2, k3, k4 = jax.random.split(key, 4)
    bd = 1.0 / np.sqrt(kernel_size * kernel_size)   # depthwise fan_in = 1 * K * K
    bp = 1.0 / np.sqrt(in_channels)                 # pointwise fan_in = C_in * 1 * 1
    return dict(
        w_dw=jax.random.uniform(k1, (in_channels, kernel_size, kernel_size),
                                jnp.float32, -bd, bd),
        b_dw=jax.random.uniform(k2, (in_channels,), jnp.float32, -bd, bd),
        w_pw=jax.random.uniform(k3, (out_channels, in_channels), jnp.float32, -bp, bp),
        b_pw=jax.random.uniform(k4, (out_channels,), jnp.float32, -bp, bp),
    )


def reference(x, params, *, padding):
    """Pure-JAX reference matching the PyTorch module."""
    C_in = x.shape[1]
    w_dw = params["w_dw"][:, None, :, :]                       # (C_in, 1, K, K)
    dw = jax.lax.conv_general_dilated(
        x, w_dw, window_strides=(1, 1),
        padding=[(padding, padding), (padding, padding)],
        dimension_numbers=("NCHW", "OIHW", "NCHW"),
        feature_group_count=C_in,
        precision=jax.lax.Precision.HIGHEST)
    dw = dw + params["b_dw"][None, :, None, None]
    w_pw = params["w_pw"][:, :, None, None]                    # (C_out, C_in, 1, 1)
    pw = jax.lax.conv_general_dilated(
        dw, w_pw, window_strides=(1, 1), padding=[(0, 0), (0, 0)],
        dimension_numbers=("NCHW", "OIHW", "NCHW"),
        precision=jax.lax.Precision.HIGHEST)
    return pw + params["b_pw"][None, :, None, None]


if __name__ == "__main__":
    key = jax.random.PRNGKey(0)
    kx, kp = jax.random.split(key)

    batch, in_channels, out_channels = 4, 4, 8
    H = W = 16
    kernel_size, padding = 3, 1

    x = jax.random.normal(kx, (batch, in_channels, H, W), dtype=jnp.float32)
    params = init_params(kp, in_channels, out_channels, kernel_size)

    out = depthwise_separable_conv(x, params, padding=padding, batch_tile=2)
    out = jax.block_until_ready(out)

    ref = reference(x, params, padding=padding)
    np.testing.assert_allclose(np.asarray(out), np.asarray(ref), rtol=1e-5, atol=1e-5)

    print("KERNEL_OK")
</pallas_src>

<mosaic_0001>
module attributes {stable_mosaic.version = 11 : i64} {
  func.func @dwsep_kernel(%arg0: i32, %arg1: memref<2x4x18x18xf32, #tpu.memory_space<vmem>>, %arg2: memref<4x3x3xf32, #tpu.memory_space<smem>>, %arg3: memref<4xf32, #tpu.memory_space<smem>>, %arg4: memref<8x4xf32, #tpu.memory_space<smem>>, %arg5: memref<8xf32, #tpu.memory_space<smem>>, %arg6: memref<2x8x16x16xf32, #tpu.memory_space<vmem>>) attributes {dimension_semantics = [#tpu.dimension_semantics<parallel>], iteration_bounds = array<i64: 2>, scalar_prefetch = 0 : i64, scratch_operands = 0 : i64, tpu.core_type = #tpu.core_type<tc>, window_params = [{transform_indices = @transform_0, window_bounds = array<i64: 2, 4, 18, 18>}, {transform_indices = @transform_1, window_bounds = array<i64: 4, 3, 3>}, {transform_indices = @transform_2, window_bounds = array<i64: 4>}, {transform_indices = @transform_3, window_bounds = array<i64: 8, 4>}, {transform_indices = @transform_4, window_bounds = array<i64: 8>}, {transform_indices = @transform_5, window_bounds = array<i64: 2, 8, 16, 16>}]} {
    %c0 = arith.constant 0 : index
    %c0_0 = arith.constant 0 : index
    %c0_1 = arith.constant 0 : index
    %c0_2 = arith.constant 0 : index
    %0 = vector.load %arg1[%c0, %c0_0, %c0_1, %c0_2] : memref<2x4x18x18xf32, #tpu.memory_space<vmem>>, vector<2x4x18x18xf32>
    %c0_3 = arith.constant 0 : index
    %1 = memref.load %arg3[%c0_3] : memref<4xf32, #tpu.memory_space<smem>>
    %2 = vector.broadcast %1 : f32 to vector<2x16x16xf32>
    %3 = vector.extract_strided_slice %0 {offsets = [0, 0, 0, 0], sizes = [2, 1, 16, 16], strides = [1, 1, 1, 1]} : vector<2x4x18x18xf32> to vector<2x1x16x16xf32>
    %4 = vector.shape_cast %3 : vector<2x1x16x16xf32> to vector<2x16x16xf32>
    %c0_4 = arith.constant 0 : index
    %c0_5 = arith.constant 0 : index
    %c0_6 = arith.constant 0 : index
    %5 = memref.load %arg2[%c0_4, %c0_5, %c0_6] : memref<4x3x3xf32, #tpu.memory_space<smem>>
    %6 = vector.broadcast %5 : f32 to vector<2x16x16xf32>
    %7 = arith.mulf %4, %6 : vector<2x16x16xf32>
    %8 = arith.addf %2, %7 : vector<2x16x16xf32>
    %9 = vector.extract_strided_slice %0 {offsets = [0, 0, 0, 1], sizes = [2, 1, 16, 16], strides = [1, 1, 1, 1]} : vector<2x4x18x18xf32> to vector<2x1x16x16xf32>
    %10 = vector.shape_cast %9 : vector<2x1x16x16xf32> to vector<2x16x16xf32>
    %c0_7 = arith.constant 0 : index
    %c0_8 = arith.constant 0 : index
    %c1 = arith.constant 1 : index
    %11 = memref.load %arg2[%c0_7, %c0_8, %c1] : memref<4x3x3xf32, #tpu.memory_space<smem>>
    %12 = vector.broadcast %11 : f32 to vector<2x16x16xf32>
    %13 = arith.mulf %10, %12 : vector<2x16x16xf32>
    %14 = arith.addf %8, %13 : vector<2x16x16xf32>
    %15 = vector.extract_strided_slice %0 {offsets = [0, 0, 0, 2], sizes = [2, 1, 16, 16], strides = [1, 1, 1, 1]} : vector<2x4x18x18xf32> to vector<2x1x16x16xf32>
    %16 = vector.shape_cast %15 : vector<2x1x16x16xf32> to vector<2x16x16xf32>
    %c0_9 = arith.constant 0 : index
    %c0_10 = arith.constant 0 : index
    %c2 = arith.constant 2 : index
    %17 = memref.load %arg2[%c0_9, %c0_10, %c2] : memref<4x3x3xf32, #tpu.memory_space<smem>>
    %18 = vector.broadcast %17 : f32 to vector<2x16x16xf32>
    %19 = arith.mulf %16, %18 : vector<2x16x16xf32>
    %20 = arith.addf %14, %19 : vector<2x16x16xf32>
    %21 = vector.extract_strided_slice %0 {offsets = [0, 0, 1, 0], sizes = [2, 1, 16, 16], strides = [1, 1, 1, 1]} : vector<2x4x18x18xf32> to vector<2x1x16x16xf32>
    %22 = vector.shape_cast %21 : vector<2x1x16x16xf32> to vector<2x16x16xf32>
    %c0_11 = arith.constant 0 : index
    %c1_12 = arith.constant 1 : index
    %c0_13 = arith.constant 0 : index
    %23 = memref.load %arg2[%c0_11, %c1_12, %c0_13] : memref<4x3x3xf32, #tpu.memory_space<smem>>
    %24 = vector.broadcast %23 : f32 to vector<2x16x16xf32>
    %25 = arith.mulf %22, %24 : vector<2x16x16xf32>
    %26 = arith.addf %20, %25 : vector<2x16x16xf32>
    %27 = vector.extract_strided_slice %0 {offsets = [0, 0, 1, 1], sizes = [2, 1, 16, 16], strides = [1, 1, 1, 1]} : vector<2x4x18x18xf32> to vector<2x1x16x16xf32>
    %28 = vector.shape_cast %27 : vector<2x1x16x16xf32> to vector<2x16x16xf32>
    %c0_14 = arith.constant 0 : index
    %c1_15 = arith.constant 1 : index
    %c1_16 = arith.constant 1 : index
    %29 = memref.load %arg2[%c0_14, %c1_15, %c1_16] : memref<4x3x3xf32, #tpu.memory_space<smem>>
    %30 = vector.broadcast %29 : f32 to vector<2x16x16xf32>
    %31 = arith.mulf %28, %30 : vector<2x16x16xf32>
    %32 = arith.addf %26, %31 : vector<2x16x16xf32>
    %33 = vector.extract_strided_slice %0 {offsets = [0, 0, 1, 2], sizes = [2, 1, 16, 16], strides = [1, 1, 1, 1]} : vector<2x4x18x18xf32> to vector<2x1x16x16xf32>
    %34 = vector.shape_cast %33 : vector<2x1x16x16xf32> to vector<2x16x16xf32>
    %c0_17 = arith.constant 0 : index
    %c1_18 = arith.constant 1 : index
    %c2_19 = arith.constant 2 : index
    %35 = memref.load %arg2[%c0_17, %c1_18, %c2_19] : memref<4x3x3xf32, #tpu.memory_space<smem>>
    %36 = vector.broadcast %35 : f32 to vector<2x16x16xf32>
    %37 = arith.mulf %34, %36 : vector<2x16x16xf32>
    %38 = arith.addf %32, %37 : vector<2x16x16xf32>
    %39 = vector.extract_strided_slice %0 {offsets = [0, 0, 2, 0], sizes = [2, 1, 16, 16], strides = [1, 1, 1, 1]} : vector<2x4x18x18xf32> to vector<2x1x16x16xf32>
    %40 = vector.shape_cast %39 : vector<2x1x16x16xf32> to vector<2x16x16xf32>
    %c0_20 = arith.constant 0 : index
    %c2_21 = arith.constant 2 : index
    %c0_22 = arith.constant 0 : index
    %41 = memref.load %arg2[%c0_20, %c2_21, %c0_22] : memref<4x3x3xf32, #tpu.memory_space<smem>>
    %42 = vector.broadcast %41 : f32 to vector<2x16x16xf32>
    %43 = arith.mulf %40, %42 : vector<2x16x16xf32>
    %44 = arith.addf %38, %43 : vector<2x16x16xf32>
    %45 = vector.extract_strided_slice %0 {offsets = [0, 0, 2, 1], sizes = [2, 1, 16, 16], strides = [1, 1, 1, 1]} : vector<2x4x18x18xf32> to vector<2x1x16x16xf32>
    %46 = vector.shape_cast %45 : vector<2x1x16x16xf32> to vector<2x16x16xf32>
    %c0_23 = arith.constant 0 : index
    %c2_24 = arith.constant 2 : index
    %c1_25 = arith.constant 1 : index
    %47 = memref.load %arg2[%c0_23, %c2_24, %c1_25] : memref<4x3x3xf32, #tpu.memory_space<smem>>
    %48 = vector.broadcast %47 : f32 to vector<2x16x16xf32>
    %49 = arith.mulf %46, %48 : vector<2x16x16xf32>
    %50 = arith.addf %44, %49 : vector<2x16x16xf32>
    %51 = vector.extract_strided_slice %0 {offsets = [0, 0, 2, 2], sizes = [2, 1, 16, 16], strides = [1, 1, 1, 1]} : vector<2x4x18x18xf32> to vector<2x1x16x16xf32>
    %52 = vector.shape_cast %51 : vector<2x1x16x16xf32> to vector<2x16x16xf32>
    %c0_26 = arith.constant 0 : index
    %c2_27 = arith.constant 2 : index
    %c2_28 = arith.constant 2 : index
    %53 = memref.load %arg2[%c0_26, %c2_27, %c2_28] : memref<4x3x3xf32, #tpu.memory_space<smem>>
    %54 = vector.broadcast %53 : f32 to vector<2x16x16xf32>
    %55 = arith.mulf %52, %54 : vector<2x16x16xf32>
    %56 = arith.addf %50, %55 : vector<2x16x16xf32>
    %c1_29 = arith.constant 1 : index
    %57 = memref.load %arg3[%c1_29] : memref<4xf32, #tpu.memory_space<smem>>
    %58 = vector.broadcast %57 : f32 to vector<2x16x16xf32>
    %59 = vector.extract_strided_slice %0 {offsets = [0, 1, 0, 0], sizes = [2, 1, 16, 16], strides = [1, 1, 1, 1]} : vector<2x4x18x18xf32> to vector<2x1x16x16xf32>
    %60 = vector.shape_cast %59 : vector<2x1x16x16xf32> to vector<2x16x16xf32>
    %c1_30 = arith.constant 1 : index
    %c0_31 = arith.constant 0 : index
    %c0_32 = arith.constant 0 : index
    %61 = memref.load %arg2[%c1_30, %c0_31, %c0_32] : memref<4x3x3xf32, #tpu.memory_space<smem>>
    %62 = vector.broadcast %61 : f32 to vector<2x16x16xf32>
    %63 = arith.mulf %60, %62 : vector<2x16x16xf32>
    %64 = arith.addf %58, %63 : vector<2x16x16xf32>
    %65 = vector.extract_strided_slice %0 {offsets = [0, 1, 0, 1], sizes = [2, 1, 16, 16], strides = [1, 1, 1, 1]} : vector<2x4x18x18xf32> to vector<2x1x16x16xf32>
    %66 = vector.shape_cast %65 : vector<2x1x16x16xf32> to vector<2x16x16xf32>
    %c1_33 = arith.constant 1 : index
    %c0_34 = arith.constant 0 : index
    %c1_35 = arith.constant 1 : index
    %67 = memref.load %arg2[%c1_33, %c0_34, %c1_35] : memref<4x3x3xf32, #tpu.memory_space<smem>>
    %68 = vector.broadcast %67 : f32 to vector<2x16x16xf32>
    %69 = arith.mulf %66, %68 : vector<2x16x16xf32>
    %70 = arith.addf %64, %69 : vector<2x16x16xf32>
    %71 = vector.extract_strided_slice %0 {offsets = [0, 1, 0, 2], sizes = [2, 1, 16, 16], strides = [1, 1, 1, 1]} : vector<2x4x18x18xf32> to vector<2x1x16x16xf32>
    %72 = vector.shape_cast %71 : vector<2x1x16x16xf32> to vector<2x16x16xf32>
    %c1_36 = arith.constant 1 : index
    %c0_37 = arith.constant 0 : index
    %c2_38 = arith.constant 2 : index
    %73 = memref.load %arg2[%c1_36, %c0_37, %c2_38] : memref<4x3x3xf32, #tpu.memory_space<smem>>
    %74 = vector.broadcast %73 : f32 to vector<2x16x16xf32>
    %75 = arith.mulf %72, %74 : vector<2x16x16xf32>
    %76 = arith.addf %70, %75 : vector<2x16x16xf32>
    %77 = vector.extract_strided_slice %0 {offsets = [0, 1, 1, 0], sizes = [2, 1, 16, 16], strides = [1, 1, 1, 1]} : vector<2x4x18x18xf32> to vector<2x1x16x16xf32>
    %78 = vector.shape_cast %77 : vector<2x1x16x16xf32> to vector<2x16x16xf32>
    %c1_39 = arith.constant 1 : index
    %c1_40 = arith.constant 1 : index
    %c0_41 = arith.constant 0 : index
    %79 = memref.load %arg2[%c1_39, %c1_40, %c0_41] : memref<4x3x3xf32, #tpu.memory_space<smem>>
    %80 = vector.broadcast %79 : f32 to vector<2x16x16xf32>
    %81 = arith.mulf %78, %80 : vector<2x16x16xf32>
    %82 = arith.addf %76, %81 : vector<2x16x16xf32>
    %83 = vector.extract_strided_slice %0 {offsets = [0, 1, 1, 1], sizes = [2, 1, 16, 16], strides = [1, 1, 1, 1]} : vector<2x4x18x18xf32> to vector<2x1x16x16xf32>
    %84 = vector.shape_cast %83 : vector<2x1x16x16xf32> to vector<2x16x16xf32>
    %c1_42 = arith.constant 1 : index
    %c1_43 = arith.constant 1 : index
    %c1_44 = arith.constant 1 : index
    %85 = memref.load %arg2[%c1_42, %c1_43, %c1_44] : memref<4x3x3xf32, #tpu.memory_space<smem>>
    %86 = vector.broadcast %85 : f32 to vector<2x16x16xf32>
    %87 = arith.mulf %84, %86 : vector<2x16x16xf32>
    %88 = arith.addf %82, %87 : vector<2x16x16xf32>
    %89 = vector.extract_strided_slice %0 {offsets = [0, 1, 1, 2], sizes = [2, 1, 16, 16], strides = [1, 1, 1, 1]} : vector<2x4x18x18xf32> to vector<2x1x16x16xf32>
    %90 = vector.shape_cast %89 : vector<2x1x16x16xf32> to vector<2x16x16xf32>
    %c1_45 = arith.constant 1 : index
    %c1_46 = arith.constant 1 : index
    %c2_47 = arith.constant 2 : index
    %91 = memref.load %arg2[%c1_45, %c1_46, %c2_47] : memref<4x3x3xf32, #tpu.memory_space<smem>>
    %92 = vector.broadcast %91 : f32 to vector<2x16x16xf32>
    %93 = arith.mulf %90, %92 : vector<2x16x16xf32>
    %94 = arith.addf %88, %93 : vector<2x16x16xf32>
    %95 = vector.extract_strided_slice %0 {offsets = [0, 1, 2, 0], sizes = [2, 1, 16, 16], strides = [1, 1, 1, 1]} : vector<2x4x18x18xf32> to vector<2x1x16x16xf32>
    %96 = vector.shape_cast %95 : vector<2x1x16x16xf32> to vector<2x16x16xf32>
    %c1_48 = arith.constant 1 : index
    %c2_49 = arith.constant 2 : index
    %c0_50 = arith.constant 0 : index
    %97 = memref.load %arg2[%c1_48, %c2_49, %c0_50] : memref<4x3x3xf32, #tpu.memory_space<smem>>
    %98 = vector.broadcast %97 : f32 to vector<2x16x16xf32>
    %99 = arith.mulf %96, %98 : vector<2x16x16xf32>
    %100 = arith.addf %94, %99 : vector<2x16x16xf32>
    %101 = vector.extract_strided_slice %0 {offsets = [0, 1, 2, 1], sizes = [2, 1, 16, 16], strides = [1, 1, 1, 1]} : vector<2x4x18x18xf32> to vector<2x1x16x16xf32>
    %102 = vector.shape_cast %101 : vector<2x1x16x16xf32> to vector<2x16x16xf32>
    %c1_51 = arith.constant 1 : index
    %c2_52 = arith.constant 2 : index
    %c1_53 = arith.constant 1 : index
    %103 = memref.load %arg2[%c1_51, %c2_52, %c1_53] : memref<4x3x3xf32, #tpu.memory_space<smem>>
    %104 = vector.broadcast %103 : f32 to vector<2x16x16xf32>
    %105 = arith.mulf %102, %104 : vector<2x16x16xf32>
    %106 = arith.addf %100, %105 : vector<2x16x16xf32>
    %107 = vector.extract_strided_slice %0 {offsets = [0, 1, 2, 2], sizes = [2, 1, 16, 16], strides = [1, 1, 1, 1]} : vector<2x4x18x18xf32> to vector<2x1x16x16xf32>
    %108 = vector.shape_cast %107 : vector<2x1x16x16xf32> to vector<2x16x16xf32>
    %c1_54 = arith.constant 1 : index
    %c2_55 = arith.constant 2 : index
    %c2_56 = arith.constant 2 : index
    %109 = memref.load %arg2[%c1_54, %c2_55, %c2_56] : memref<4x3x3xf32, #tpu.memory_space<smem>>
    %110 = vector.broadcast %109 : f32 to vector<2x16x16xf32>
    %111 = arith.mulf %108, %110 : vector<2x16x16xf32>
    %112 = arith.addf %106, %111 : vector<2x16x16xf32>
    %c2_57 = arith.constant 2 : index
    %113 = memref.load %arg3[%c2_57] : memref<4xf32, #tpu.memory_space<smem>>
    %114 = vector.broadcast %113 : f32 to vector<2x16x16xf32>
    %115 = vector.extract_strided_slice %0 {offsets = [0, 2, 0, 0], sizes = [2, 1, 16, 16], strides = [1, 1, 1, 1]} : vector<2x4x18x18xf32> to vector<2x1x16x16xf32>
    %116 = vector.shape_cast %115 : vector<2x1x16x16xf32> to vector<2x16x16xf32>
    %c2_58 = arith.constant 2 : index
    %c0_59 = arith.constant 0 : index
    %c0_60 = arith.constant 0 : index
    %117 = memref.load %arg2[%c2_58, %c0_59, %c0_60] : memref<4x3x3xf32, #tpu.memory_space<smem>>
    %118 = vector.broadcast %117 : f32 to vector<2x16x16xf32>
    %119 = arith.mulf %116, %118 : vector<2x16x16xf32>
    %120 = arith.addf %114, %119 : vector<2x16x16xf32>
    %121 = vector.extract_strided_slice %0 {offsets = [0, 2, 0, 1], sizes = [2, 1, 16, 16], strides = [1, 1, 1, 1]} : vector<2x4x18x18xf32> to vector<2x1x16x16xf32>
    %122 = vector.shape_cast %121 : vector<2x1x16x16xf32> to vector<2x16x16xf32>
    %c2_61 = arith.constant 2 : index
    %c0_62 = arith.constant 0 : index
    %c1_63 = arith.constant 1 : index
    %123 = memref.load %arg2[%c2_61, %c0_62, %c1_63] : memref<4x3x3xf32, #tpu.memory_space<smem>>
    %124 = vector.broadcast %123 : f32 to vector<2x16x16xf32>
    %125 = arith.mulf %122, %124 : vector<2x16x16xf32>
    %126 = arith.addf %120, %125 : vector<2x16x16xf32>
    %127 = vector.extract_strided_slice %0 {offsets = [0, 2, 0, 2], sizes = [2, 1, 16, 16], strides = [1, 1, 1, 1]} : vector<2x4x18x18xf32> to vector<2x1x16x16xf32>
    %128 = vector.shape_cast %127 : vector<2x1x16x16xf32> to vector<2x16x16xf32>
    %c2_64 = arith.constant 2 : index
    %c0_65 = arith.constant 0 : index
    %c2_66 = arith.constant 2 : index
    %129 = memref.load %arg2[%c2_64, %c0_65, %c2_66] : memref<4x3x3xf32, #tpu.memory_space<smem>>
    %130 = vector.broadcast %129 : f32 to vector<2x16x16xf32>
    %131 = arith.mulf %128, %130 : vector<2x16x16xf32>
    %132 = arith.addf %126, %131 : vector<2x16x16xf32>
    %133 = vector.extract_strided_slice %0 {offsets = [0, 2, 1, 0], sizes = [2, 1, 16, 16], strides = [1, 1, 1, 1]} : vector<2x4x18x18xf32> to vector<2x1x16x16xf32>
    %134 = vector.shape_cast %133 : vector<2x1x16x16xf32> to vector<2x16x16xf32>
    %c2_67 = arith.constant 2 : index
    %c1_68 = arith.constant 1 : index
    %c0_69 = arith.constant 0 : index
    %135 = memref.load %arg2[%c2_67, %c1_68, %c0_69] : memref<4x3x3xf32, #tpu.memory_space<smem>>
    %136 = vector.broadcast %135 : f32 to vector<2x16x16xf32>
    %137 = arith.mulf %134, %136 : vector<2x16x16xf32>
    %138 = arith.addf %132, %137 : vector<2x16x16xf32>
    %139 = vector.extract_strided_slice %0 {offsets = [0, 2, 1, 1], sizes = [2, 1, 16, 16], strides = [1, 1, 1, 1]} : vector<2x4x18x18xf32> to vector<2x1x16x16xf32>
    %140 = vector.shape_cast %139 : vector<2x1x16x16xf32> to vector<2x16x16xf32>
    %c2_70 = arith.constant 2 : index
    %c1_71 = arith.constant 1 : index
    %c1_72 = arith.constant 1 : index
    %141 = memref.load %arg2[%c2_70, %c1_71, %c1_72] : memref<4x3x3xf32, #tpu.memory_space<smem>>
    %142 = vector.broadcast %141 : f32 to vector<2x16x16xf32>
    %143 = arith.mulf %140, %142 : vector<2x16x16xf32>
    %144 = arith.addf %138, %143 : vector<2x16x16xf32>
    %145 = vector.extract_strided_slice %0 {offsets = [0, 2, 1, 2], sizes = [2, 1, 16, 16], strides = [1, 1, 1, 1]} : vector<2x4x18x18xf32> to vector<2x1x16x16xf32>
    %146 = vector.shape_cast %145 : vector<2x1x16x16xf32> to vector<2x16x16xf32>
    %c2_73 = arith.constant 2 : index
    %c1_74 = arith.constant 1 : index
    %c2_75 = arith.constant 2 : index
    %147 = memref.load %arg2[%c2_73, %c1_74, %c2_75] : memref<4x3x3xf32, #tpu.memory_space<smem>>
    %148 = vector.broadcast %147 : f32 to vector<2x16x16xf32>
    %149 = arith.mulf %146, %148 : vector<2x16x16xf32>
    %150 = arith.addf %144, %149 : vector<2x16x16xf32>
    %151 = vector.extract_strided_slice %0 {offsets = [0, 2, 2, 0], sizes = [2, 1, 16, 16], strides = [1, 1, 1, 1]} : vector<2x4x18x18xf32> to vector<2x1x16x16xf32>
    %152 = vector.shape_cast %151 : vector<2x1x16x16xf32> to vector<2x16x16xf32>
    %c2_76 = arith.constant 2 : index
    %c2_77 = arith.constant 2 : index
    %c0_78 = arith.constant 0 : index
    %153 = memref.load %arg2[%c2_76, %c2_77, %c0_78] : memref<4x3x3xf32, #tpu.memory_space<smem>>
    %154 = vector.broadcast %153 : f32 to vector<2x16x16xf32>
    %155 = arith.mulf %152, %154 : vector<2x16x16xf32>
    %156 = arith.addf %150, %155 : vector<2x16x16xf32>
    %157 = vector.extract_strided_slice %0 {offsets = [0, 2, 2, 1], sizes = [2, 1, 16, 16], strides = [1, 1, 1, 1]} : vector<2x4x18x18xf32> to vector<2x1x16x16xf32>
    %158 = vector.shape_cast %157 : vector<2x1x16x16xf32> to vector<2x16x16xf32>
    %c2_79 = arith.constant 2 : index
    %c2_80 = arith.constant 2 : index
    %c1_81 = arith.constant 1 : index
    %159 = memref.load %arg2[%c2_79, %c2_80, %c1_81] : memref<4x3x3xf32, #tpu.memory_space<smem>>
    %160 = vector.broadcast %159 : f32 to vector<2x16x16xf32>
    %161 = arith.mulf %158, %160 : vector<2x16x16xf32>
    %162 = arith.addf %156, %161 : vector<2x16x16xf32>
    %163 = vector.extract_strided_slice %0 {offsets = [0, 2, 2, 2], sizes = [2, 1, 16, 16], strides = [1, 1, 1, 1]} : vector<2x4x18x18xf32> to vector<2x1x16x16xf32>
    %164 = vector.shape_cast %163 : vector<2x1x16x16xf32> to vector<2x16x16xf32>
    %c2_82 = arith.constant 2 : index
    %c2_83 = arith.constant 2 : index
    %c2_84 = arith.constant 2 : index
    %165 = memref.load %arg2[%c2_82, %c2_83, %c2_84] : memref<4x3x3xf32, #tpu.memory_space<smem>>
    %166 = vector.broadcast %165 : f32 to vector<2x16x16xf32>
    %167 = arith.mulf %164, %166 : vector<2x16x16xf32>
    %168 = arith.addf %162, %167 : vector<2x16x16xf32>
    %c3 = arith.constant 3 : index
    %169 = memref.load %arg3[%c3] : memref<4xf32, #tpu.memory_space<smem>>
    %170 = vector.broadcast %169 : f32 to vector<2x16x16xf32>
    %171 = vector.extract_strided_slice %0 {offsets = [0, 3, 0, 0], sizes = [2, 1, 16, 16], strides = [1, 1, 1, 1]} : vector<2x4x18x18xf32> to vector<2x1x16x16xf32>
    %172 = vector.shape_cast %171 : vector<2x1x16x16xf32> to vector<2x16x16xf32>
    %c3_85 = arith.constant 3 : index
    %c0_86 = arith.constant 0 : index
    %c0_87 = arith.constant 0 : index
    %173 = memref.load %arg2[%c3_85, %c0_86, %c0_87] : memref<4x3x3xf32, #tpu.memory_space<smem>>
    %174 = vector.broadcast %173 : f32 to vector<2x16x16xf32>
    %175 = arith.mulf %172, %174 : vector<2x16x16xf32>
    %176 = arith.addf %170, %175 : vector<2x16x16xf32>
    %177 = vector.extract_strided_slice %0 {offsets = [0, 3, 0, 1], sizes = [2, 1, 16, 16], strides = [1, 1, 1, 1]} : vector<2x4x18x18xf32> to vector<2x1x16x16xf32>
    %178 = vector.shape_cast %177 : vector<2x1x16x16xf32> to vector<2x16x16xf32>
    %c3_88 = arith.constant 3 : index
    %c0_89 = arith.constant 0 : index
    %c1_90 = arith.constant 1 : index
    %179 = memref.load %arg2[%c3_88, %c0_89, %c1_90] : memref<4x3x3xf32, #tpu.memory_space<smem>>
    %180 = vector.broadcast %179 : f32 to vector<2x16x16xf32>
    %181 = arith.mulf %178, %180 : vector<2x16x16xf32>
    %182 = arith.addf %176, %181 : vector<2x16x16xf32>
    %183 = vector.extract_strided_slice %0 {offsets = [0, 3, 0, 2], sizes = [2, 1, 16, 16], strides = [1, 1, 1, 1]} : vector<2x4x18x18xf32> to vector<2x1x16x16xf32>
    %184 = vector.shape_cast %183 : vector<2x1x16x16xf32> to vector<2x16x16xf32>
    %c3_91 = arith.constant 3 : index
    %c0_92 = arith.constant 0 : index
    %c2_93 = arith.constant 2 : index
    %185 = memref.load %arg2[%c3_91, %c0_92, %c2_93] : memref<4x3x3xf32, #tpu.memory_space<smem>>
    %186 = vector.broadcast %185 : f32 to vector<2x16x16xf32>
    %187 = arith.mulf %184, %186 : vector<2x16x16xf32>
    %188 = arith.addf %182, %187 : vector<2x16x16xf32>
    %189 = vector.extract_strided_slice %0 {offsets = [0, 3, 1, 0], sizes = [2, 1, 16, 16], strides = [1, 1, 1, 1]} : vector<2x4x18x18xf32> to vector<2x1x16x16xf32>
    %190 = vector.shape_cast %189 : vector<2x1x16x16xf32> to vector<2x16x16xf32>
    %c3_94 = arith.constant 3 : index
    %c1_95 = arith.constant 1 : index
    %c0_96 = arith.constant 0 : index
    %191 = memref.load %arg2[%c3_94, %c1_95, %c0_96] : memref<4x3x3xf32, #tpu.memory_space<smem>>
    %192 = vector.broadcast %191 : f32 to vector<2x16x16xf32>
    %193 = arith.mulf %190, %192 : vector<2x16x16xf32>
    %194 = arith.addf %188, %193 : vector<2x16x16xf32>
    %195 = vector.extract_strided_slice %0 {offsets = [0, 3, 1, 1], sizes = [2, 1, 16, 16], strides = [1, 1, 1, 1]} : vector<2x4x18x18xf32> to vector<2x1x16x16xf32>
    %196 = vector.shape_cast %195 : vector<2x1x16x16xf32> to vector<2x16x16xf32>
    %c3_97 = arith.constant 3 : index
    %c1_98 = arith.constant 1 : index
    %c1_99 = arith.constant 1 : index
    %197 = memref.load %arg2[%c3_97, %c1_98, %c1_99] : memref<4x3x3xf32, #tpu.memory_space<smem>>
    %198 = vector.broadcast %197 : f32 to vector<2x16x16xf32>
    %199 = arith.mulf %196, %198 : vector<2x16x16xf32>
    %200 = arith.addf %194, %199 : vector<2x16x16xf32>
    %201 = vector.extract_strided_slice %0 {offsets = [0, 3, 1, 2], sizes = [2, 1, 16, 16], strides = [1, 1, 1, 1]} : vector<2x4x18x18xf32> to vector<2x1x16x16xf32>
    %202 = vector.shape_cast %201 : vector<2x1x16x16xf32> to vector<2x16x16xf32>
    %c3_100 = arith.constant 3 : index
    %c1_101 = arith.constant 1 : index
    %c2_102 = arith.constant 2 : index
    %203 = memref.load %arg2[%c3_100, %c1_101, %c2_102] : memref<4x3x3xf32, #tpu.memory_space<smem>>
    %204 = vector.broadcast %203 : f32 to vector<2x16x16xf32>
    %205 = arith.mulf %202, %204 : vector<2x16x16xf32>
    %206 = arith.addf %200, %205 : vector<2x16x16xf32>
    %207 = vector.extract_strided_slice %0 {offsets = [0, 3, 2, 0], sizes = [2, 1, 16, 16], strides = [1, 1, 1, 1]} : vector<2x4x18x18xf32> to vector<2x1x16x16xf32>
    %208 = vector.shape_cast %207 : vector<2x1x16x16xf32> to vector<2x16x16xf32>
    %c3_103 = arith.constant 3 : index
    %c2_104 = arith.constant 2 : index
    %c0_105 = arith.constant 0 : index
    %209 = memref.load %arg2[%c3_103, %c2_104, %c0_105] : memref<4x3x3xf32, #tpu.memory_space<smem>>
    %210 = vector.broadcast %209 : f32 to vector<2x16x16xf32>
    %211 = arith.mulf %208, %210 : vector<2x16x16xf32>
    %212 = arith.addf %206, %211 : vector<2x16x16xf32>
    %213 = vector.extract_strided_slice %0 {offsets = [0, 3, 2, 1], sizes = [2, 1, 16, 16], strides = [1, 1, 1, 1]} : vector<2x4x18x18xf32> to vector<2x1x16x16xf32>
    %214 = vector.shape_cast %213 : vector<2x1x16x16xf32> to vector<2x16x16xf32>
    %c3_106 = arith.constant 3 : index
    %c2_107 = arith.constant 2 : index
    %c1_108 = arith.constant 1 : index
    %215 = memref.load %arg2[%c3_106, %c2_107, %c1_108] : memref<4x3x3xf32, #tpu.memory_space<smem>>
    %216 = vector.broadcast %215 : f32 to vector<2x16x16xf32>
    %217 = arith.mulf %214, %216 : vector<2x16x16xf32>
    %218 = arith.addf %212, %217 : vector<2x16x16xf32>
    %219 = vector.extract_strided_slice %0 {offsets = [0, 3, 2, 2], sizes = [2, 1, 16, 16], strides = [1, 1, 1, 1]} : vector<2x4x18x18xf32> to vector<2x1x16x16xf32>
    %220 = vector.shape_cast %219 : vector<2x1x16x16xf32> to vector<2x16x16xf32>
    %c3_109 = arith.constant 3 : index
    %c2_110 = arith.constant 2 : index
    %c2_111 = arith.constant 2 : index
    %221 = memref.load %arg2[%c3_109, %c2_110, %c2_111] : memref<4x3x3xf32, #tpu.memory_space<smem>>
    %222 = vector.broadcast %221 : f32 to vector<2x16x16xf32>
    %223 = arith.mulf %220, %222 : vector<2x16x16xf32>
    %224 = arith.addf %218, %223 : vector<2x16x16xf32>
    %c0_112 = arith.constant 0 : index
    %225 = memref.load %arg5[%c0_112] : memref<8xf32, #tpu.memory_space<smem>>
    %226 = vector.broadcast %225 : f32 to vector<2x16x16xf32>
    %c0_113 = arith.constant 0 : index
    %c0_114 = arith.constant 0 : index
    %227 = memref.load %arg4[%c0_113, %c0_114] : memref<8x4xf32, #tpu.memory_space<smem>>
    %228 = vector.broadcast %227 : f32 to vector<2x16x16xf32>
    %229 = arith.mulf %56, %228 : vector<2x16x16xf32>
    %230 = arith.addf %226, %229 : vector<2x16x16xf32>
    %c0_115 = arith.constant 0 : index
    %c1_116 = arith.constant 1 : index
    %231 = memref.load %arg4[%c0_115, %c1_116] : memref<8x4xf32, #tpu.memory_space<smem>>
    %232 = vector.broadcast %231 : f32 to vector<2x16x16xf32>
    %233 = arith.mulf %112, %232 : vector<2x16x16xf32>
    %234 = arith.addf %230, %233 : vector<2x16x16xf32>
    %c0_117 = arith.constant 0 : index
    %c2_118 = arith.constant 2 : index
    %235 = memref.load %arg4[%c0_117, %c2_118] : memref<8x4xf32, #tpu.memory_space<smem>>
    %236 = vector.broadcast %235 : f32 to vector<2x16x16xf32>
    %237 = arith.mulf %168, %236 : vector<2x16x16xf32>
    %238 = arith.addf %234, %237 : vector<2x16x16xf32>
    %c0_119 = arith.constant 0 : index
    %c3_120 = arith.constant 3 : index
    %239 = memref.load %arg4[%c0_119, %c3_120] : memref<8x4xf32, #tpu.memory_space<smem>>
    %240 = vector.broadcast %239 : f32 to vector<2x16x16xf32>
    %241 = arith.mulf %224, %240 : vector<2x16x16xf32>
    %242 = arith.addf %238, %241 : vector<2x16x16xf32>
    %243 = vector.shape_cast %242 : vector<2x16x16xf32> to vector<2x1x16x16xf32>
    %c0_121 = arith.constant 0 : index
    %c0_122 = arith.constant 0 : index
    %c0_123 = arith.constant 0 : index
    %c0_124 = arith.constant 0 : index
    %244 = vector.load %arg6[%c0_121, %c0_122, %c0_123, %c0_124] : memref<2x8x16x16xf32, #tpu.memory_space<vmem>>, vector<2x1x16x16xf32>
    tpu.vector_store %arg6[%c0_121, %c0_122, %c0_123, %c0_124], %243 {strides = array<i32>} : memref<2x8x16x16xf32, #tpu.memory_space<vmem>>, vector<2x1x16x16xf32>,
    %c1_125 = arith.constant 1 : index
    %245 = memref.load %arg5[%c1_125] : memref<8xf32, #tpu.memory_space<smem>>
    %246 = vector.broadcast %245 : f32 to vector<2x16x16xf32>
    %c1_126 = arith.constant 1 : index
    %c0_127 = arith.constant 0 : index
    %247 = memref.load %arg4[%c1_126, %c0_127] : memref<8x4xf32, #tpu.memory_space<smem>>
    %248 = vector.broadcast %247 : f32 to vector<2x16x16xf32>
    %249 = arith.mulf %56, %248 : vector<2x16x16xf32>
    %250 = arith.addf %246, %249 : vector<2x16x16xf32>
    %c1_128 = arith.constant 1 : index
    %c1_129 = arith.constant 1 : index
    %251 = memref.load %arg4[%c1_128, %c1_129] : memref<8x4xf32, #tpu.memory_space<smem>>
    %252 = vector.broadcast %251 : f32 to vector<2x16x16xf32>
    %253 = arith.mulf %112, %252 : vector<2x16x16xf32>
    %254 = arith.addf %250, %253 : vector<2x16x16xf32>
    %c1_130 = arith.constant 1 : index
    %c2_131 = arith.constant 2 : index
    %255 = memref.load %arg4[%c1_130, %c2_131] : memref<8x4xf32, #tpu.memory_space<smem>>
    %256 = vector.broadcast %255 : f32 to vector<2x16x16xf32>
    %257 = arith.mulf %168, %256 : vector<2x16x16xf32>
    %258 = arith.addf %254, %257 : vector<2x16x16xf32>
    %c1_132 = arith.constant 1 : index
    %c3_133 = arith.constant 3 : index
    %259 = memref.load %arg4[%c1_132, %c3_133] : memref<8x4xf32, #tpu.memory_space<smem>>
    %260 = vector.broadcast %259 : f32 to vector<2x16x16xf32>
    %261 = arith.mulf %224, %260 : vector<2x16x16xf32>
    %262 = arith.addf %258, %261 : vector<2x16x16xf32>
    %263 = vector.shape_cast %262 : vector<2x16x16xf32> to vector<2x1x16x16xf32>
    %c0_134 = arith.constant 0 : index
    %c1_135 = arith.constant 1 : index
    %c0_136 = arith.constant 0 : index
    %c0_137 = arith.constant 0 : index
    %264 = vector.load %arg6[%c0_134, %c1_135, %c0_136, %c0_137] : memref<2x8x16x16xf32, #tpu.memory_space<vmem>>, vector<2x1x16x16xf32>
    tpu.vector_store %arg6[%c0_134, %c1_135, %c0_136, %c0_137], %263 {strides = array<i32>} : memref<2x8x16x16xf32, #tpu.memory_space<vmem>>, vector<2x1x16x16xf32>,
    %c2_138 = arith.constant 2 : index
    %265 = memref.load %arg5[%c2_138] : memref<8xf32, #tpu.memory_space<smem>>
    %266 = vector.broadcast %265 : f32 to vector<2x16x16xf32>
    %c2_139 = arith.constant 2 : index
    %c0_140 = arith.constant 0 : index
    %267 = memref.load %arg4[%c2_139, %c0_140] : memref<8x4xf32, #tpu.memory_space<smem>>
    %268 = vector.broadcast %267 : f32 to vector<2x16x16xf32>
    %269 = arith.mulf %56, %268 : vector<2x16x16xf32>
    %270 = arith.addf %266, %269 : vector<2x16x16xf32>
    %c2_141 = arith.constant 2 : index
    %c1_142 = arith.constant 1 : index
    %271 = memref.load %arg4[%c2_141, %c1_142] : memref<8x4xf32, #tpu.memory_space<smem>>
    %272 = vector.broadcast %271 : f32 to vector<2x16x16xf32>
    %273 = arith.mulf %112, %272 : vector<2x16x16xf32>
    %274 = arith.addf %270, %273 : vector<2x16x16xf32>
    %c2_143 = arith.constant 2 : index
    %c2_144 = arith.constant 2 : index
    %275 = memref.load %arg4[%c2_143, %c2_144] : memref<8x4xf32, #tpu.memory_space<smem>>
    %276 = vector.broadcast %275 : f32 to vector<2x16x16xf32>
    %277 = arith.mulf %168, %276 : vector<2x16x16xf32>
    %278 = arith.addf %274, %277 : vector<2x16x16xf32>
    %c2_145 = arith.constant 2 : index
    %c3_146 = arith.constant 3 : index
    %279 = memref.load %arg4[%c2_145, %c3_146] : memref<8x4xf32, #tpu.memory_space<smem>>
    %280 = vector.broadcast %279 : f32 to vector<2x16x16xf32>
    %281 = arith.mulf %224, %280 : vector<2x16x16xf32>
    %282 = arith.addf %278, %281 : vector<2x16x16xf32>
    %283 = vector.shape_cast %282 : vector<2x16x16xf32> to vector<2x1x16x16xf32>
    %c0_147 = arith.constant 0 : index
    %c2_148 = arith.constant 2 : index
    %c0_149 = arith.constant 0 : index
    %c0_150 = arith.constant 0 : index
    %284 = vector.load %arg6[%c0_147, %c2_148, %c0_149, %c0_150] : memref<2x8x16x16xf32, #tpu.memory_space<vmem>>, vector<2x1x16x16xf32>
    tpu.vector_store %arg6[%c0_147, %c2_148, %c0_149, %c0_150], %283 {strides = array<i32>} : memref<2x8x16x16xf32, #tpu.memory_space<vmem>>, vector<2x1x16x16xf32>,
    %c3_151 = arith.constant 3 : index
    %285 = memref.load %arg5[%c3_151] : memref<8xf32, #tpu.memory_space<smem>>
    %286 = vector.broadcast %285 : f32 to vector<2x16x16xf32>
    %c3_152 = arith.constant 3 : index
    %c0_153 = arith.constant 0 : index
    %287 = memref.load %arg4[%c3_152, %c0_153] : memref<8x4xf32, #tpu.memory_space<smem>>
    %288 = vector.broadcast %287 : f32 to vector<2x16x16xf32>
    %289 = arith.mulf %56, %288 : vector<2x16x16xf32>
    %290 = arith.addf %286, %289 : vector<2x16x16xf32>
    %c3_154 = arith.constant 3 : index
    %c1_155 = arith.constant 1 : index
    %291 = memref.load %arg4[%c3_154, %c1_155] : memref<8x4xf32, #tpu.memory_space<smem>>
    %292 = vector.broadcast %291 : f32 to vector<2x16x16xf32>
    %293 = arith.mulf %112, %292 : vector<2x16x16xf32>
    %294 = arith.addf %290, %293 : vector<2x16x16xf32>
    %c3_156 = arith.constant 3 : index
    %c2_157 = arith.constant 2 : index
    %295 = memref.load %arg4[%c3_156, %c2_157] : memref<8x4xf32, #tpu.memory_space<smem>>
    %296 = vector.broadcast %295 : f32 to vector<2x16x16xf32>
    %297 = arith.mulf %168, %296 : vector<2x16x16xf32>
    %298 = arith.addf %294, %297 : vector<2x16x16xf32>
    %c3_158 = arith.constant 3 : index
    %c3_159 = arith.constant 3 : index
    %299 = memref.load %arg4[%c3_158, %c3_159] : memref<8x4xf32, #tpu.memory_space<smem>>
    %300 = vector.broadcast %299 : f32 to vector<2x16x16xf32>
    %301 = arith.mulf %224, %300 : vector<2x16x16xf32>
    %302 = arith.addf %298, %301 : vector<2x16x16xf32>
    %303 = vector.shape_cast %302 : vector<2x16x16xf32> to vector<2x1x16x16xf32>
    %c0_160 = arith.constant 0 : index
    %c3_161 = arith.constant 3 : index
    %c0_162 = arith.constant 0 : index
    %c0_163 = arith.constant 0 : index
    %304 = vector.load %arg6[%c0_160, %c3_161, %c0_162, %c0_163] : memref<2x8x16x16xf32, #tpu.memory_space<vmem>>, vector<2x1x16x16xf32>
    tpu.vector_store %arg6[%c0_160, %c3_161, %c0_162, %c0_163], %303 {strides = array<i32>} : memref<2x8x16x16xf32, #tpu.memory_space<vmem>>, vector<2x1x16x16xf32>,
    %c4 = arith.constant 4 : index
    %305 = memref.load %arg5[%c4] : memref<8xf32, #tpu.memory_space<smem>>
    %306 = vector.broadcast %305 : f32 to vector<2x16x16xf32>
    %c4_164 = arith.constant 4 : index
    %c0_165 = arith.constant 0 : index
    %307 = memref.load %arg4[%c4_164, %c0_165] : memref<8x4xf32, #tpu.memory_space<smem>>
    %308 = vector.broadcast %307 : f32 to vector<2x16x16xf32>
    %309 = arith.mulf %56, %308 : vector<2x16x16xf32>
    %310 = arith.addf %306, %309 : vector<2x16x16xf32>
    %c4_166 = arith.constant 4 : index
    %c1_167 = arith.constant 1 : index
    %311 = memref.load %arg4[%c4_166, %c1_167] : memref<8x4xf32, #tpu.memory_space<smem>>
    %312 = vector.broadcast %311 : f32 to vector<2x16x16xf32>
    %313 = arith.mulf %112, %312 : vector<2x16x16xf32>
    %314 = arith.addf %310, %313 : vector<2x16x16xf32>
    %c4_168 = arith.constant 4 : index
    %c2_169 = arith.constant 2 : index
    %315 = memref.load %arg4[%c4_168, %c2_169] : memref<8x4xf32, #tpu.memory_space<smem>>
    %316 = vector.broadcast %315 : f32 to vector<2x16x16xf32>
    %317 = arith.mulf %168, %316 : vector<2x16x16xf32>
    %318 = arith.addf %314, %317 : vector<2x16x16xf32>
    %c4_170 = arith.constant 4 : index
    %c3_171 = arith.constant 3 : index
    %319 = memref.load %arg4[%c4_170, %c3_171] : memref<8x4xf32, #tpu.memory_space<smem>>
    %320 = vector.broadcast %319 : f32 to vector<2x16x16xf32>
    %321 = arith.mulf %224, %320 : vector<2x16x16xf32>
    %322 = arith.addf %318, %321 : vector<2x16x16xf32>
    %323 = vector.shape_cast %322 : vector<2x16x16xf32> to vector<2x1x16x16xf32>
    %c0_172 = arith.constant 0 : index
    %c4_173 = arith.constant 4 : index
    %c0_174 = arith.constant 0 : index
    %c0_175 = arith.constant 0 : index
    %324 = vector.load %arg6[%c0_172, %c4_173, %c0_174, %c0_175] : memref<2x8x16x16xf32, #tpu.memory_space<vmem>>, vector<2x1x16x16xf32>
    tpu.vector_store %arg6[%c0_172, %c4_173, %c0_174, %c0_175], %323 {strides = array<i32>} : memref<2x8x16x16xf32, #tpu.memory_space<vmem>>, vector<2x1x16x16xf32>,
    %c5 = arith.constant 5 : index
    %325 = memref.load %arg5[%c5] : memref<8xf32, #tpu.memory_space<smem>>
    %326 = vector.broadcast %325 : f32 to vector<2x16x16xf32>
    %c5_176 = arith.constant 5 : index
    %c0_177 = arith.constant 0 : index
    %327 = memref.load %arg4[%c5_176, %c0_177] : memref<8x4xf32, #tpu.memory_space<smem>>
    %328 = vector.broadcast %327 : f32 to vector<2x16x16xf32>
    %329 = arith.mulf %56, %328 : vector<2x16x16xf32>
    %330 = arith.addf %326, %329 : vector<2x16x16xf32>
    %c5_178 = arith.constant 5 : index
    %c1_179 = arith.constant 1 : index
    %331 = memref.load %arg4[%c5_178, %c1_179] : memref<8x4xf32, #tpu.memory_space<smem>>
    %332 = vector.broadcast %331 : f32 to vector<2x16x16xf32>
    %333 = arith.mulf %112, %332 : vector<2x16x16xf32>
    %334 = arith.addf %330, %333 : vector<2x16x16xf32>
    %c5_180 = arith.constant 5 : index
    %c2_181 = arith.constant 2 : index
    %335 = memref.load %arg4[%c5_180, %c2_181] : memref<8x4xf32, #tpu.memory_space<smem>>
    %336 = vector.broadcast %335 : f32 to vector<2x16x16xf32>
    %337 = arith.mulf %168, %336 : vector<2x16x16xf32>
    %338 = arith.addf %334, %337 : vector<2x16x16xf32>
    %c5_182 = arith.constant 5 : index
    %c3_183 = arith.constant 3 : index
    %339 = memref.load %arg4[%c5_182, %c3_183] : memref<8x4xf32, #tpu.memory_space<smem>>
    %340 = vector.broadcast %339 : f32 to vector<2x16x16xf32>
    %341 = arith.mulf %224, %340 : vector<2x16x16xf32>
    %342 = arith.addf %338, %341 : vector<2x16x16xf32>
    %343 = vector.shape_cast %342 : vector<2x16x16xf32> to vector<2x1x16x16xf32>
    %c0_184 = arith.constant 0 : index
    %c5_185 = arith.constant 5 : index
    %c0_186 = arith.constant 0 : index
    %c0_187 = arith.constant 0 : index
    %344 = vector.load %arg6[%c0_184, %c5_185, %c0_186, %c0_187] : memref<2x8x16x16xf32, #tpu.memory_space<vmem>>, vector<2x1x16x16xf32>
    tpu.vector_store %arg6[%c0_184, %c5_185, %c0_186, %c0_187], %343 {strides = array<i32>} : memref<2x8x16x16xf32, #tpu.memory_space<vmem>>, vector<2x1x16x16xf32>,
    %c6 = arith.constant 6 : index
    %345 = memref.load %arg5[%c6] : memref<8xf32, #tpu.memory_space<smem>>
    %346 = vector.broadcast %345 : f32 to vector<2x16x16xf32>
    %c6_188 = arith.constant 6 : index
    %c0_189 = arith.constant 0 : index
    %347 = memref.load %arg4[%c6_188, %c0_189] : memref<8x4xf32, #tpu.memory_space<smem>>
    %348 = vector.broadcast %347 : f32 to vector<2x16x16xf32>
    %349 = arith.mulf %56, %348 : vector<2x16x16xf32>
    %350 = arith.addf %346, %349 : vector<2x16x16xf32>
    %c6_190 = arith.constant 6 : index
    %c1_191 = arith.constant 1 : index
    %351 = memref.load %arg4[%c6_190, %c1_191] : memref<8x4xf32, #tpu.memory_space<smem>>
    %352 = vector.broadcast %351 : f32 to vector<2x16x16xf32>
    %353 = arith.mulf %112, %352 : vector<2x16x16xf32>
    %354 = arith.addf %350, %353 : vector<2x16x16xf32>
    %c6_192 = arith.constant 6 : index
    %c2_193 = arith.constant 2 : index
    %355 = memref.load %arg4[%c6_192, %c2_193] : memref<8x4xf32, #tpu.memory_space<smem>>
    %356 = vector.broadcast %355 : f32 to vector<2x16x16xf32>
    %357 = arith.mulf %168, %356 : vector<2x16x16xf32>
    %358 = arith.addf %354, %357 : vector<2x16x16xf32>
    %c6_194 = arith.constant 6 : index
    %c3_195 = arith.constant 3 : index
    %359 = memref.load %arg4[%c6_194, %c3_195] : memref<8x4xf32, #tpu.memory_space<smem>>
    %360 = vector.broadcast %359 : f32 to vector<2x16x16xf32>
    %361 = arith.mulf %224, %360 : vector<2x16x16xf32>
    %362 = arith.addf %358, %361 : vector<2x16x16xf32>
    %363 = vector.shape_cast %362 : vector<2x16x16xf32> to vector<2x1x16x16xf32>
    %c0_196 = arith.constant 0 : index
    %c6_197 = arith.constant 6 : index
    %c0_198 = arith.constant 0 : index
    %c0_199 = arith.constant 0 : index
    %364 = vector.load %arg6[%c0_196, %c6_197, %c0_198, %c0_199] : memref<2x8x16x16xf32, #tpu.memory_space<vmem>>, vector<2x1x16x16xf32>
    tpu.vector_store %arg6[%c0_196, %c6_197, %c0_198, %c0_199], %363 {strides = array<i32>} : memref<2x8x16x16xf32, #tpu.memory_space<vmem>>, vector<2x1x16x16xf32>,
    %c7 = arith.constant 7 : index
    %365 = memref.load %arg5[%c7] : memref<8xf32, #tpu.memory_space<smem>>
    %366 = vector.broadcast %365 : f32 to vector<2x16x16xf32>
    %c7_200 = arith.constant 7 : index
    %c0_201 = arith.constant 0 : index
    %367 = memref.load %arg4[%c7_200, %c0_201] : memref<8x4xf32, #tpu.memory_space<smem>>
    %368 = vector.broadcast %367 : f32 to vector<2x16x16xf32>
    %369 = arith.mulf %56, %368 : vector<2x16x16xf32>
    %370 = arith.addf %366, %369 : vector<2x16x16xf32>
    %c7_202 = arith.constant 7 : index
    %c1_203 = arith.constant 1 : index
    %371 = memref.load %arg4[%c7_202, %c1_203] : memref<8x4xf32, #tpu.memory_space<smem>>
    %372 = vector.broadcast %371 : f32 to vector<2x16x16xf32>
    %373 = arith.mulf %112, %372 : vector<2x16x16xf32>
    %374 = arith.addf %370, %373 : vector<2x16x16xf32>
    %c7_204 = arith.constant 7 : index
    %c2_205 = arith.constant 2 : index
    %375 = memref.load %arg4[%c7_204, %c2_205] : memref<8x4xf32, #tpu.memory_space<smem>>
    %376 = vector.broadcast %375 : f32 to vector<2x16x16xf32>
    %377 = arith.mulf %168, %376 : vector<2x16x16xf32>
    %378 = arith.addf %374, %377 : vector<2x16x16xf32>
    %c7_206 = arith.constant 7 : index
    %c3_207 = arith.constant 3 : index
    %379 = memref.load %arg4[%c7_206, %c3_207] : memref<8x4xf32, #tpu.memory_space<smem>>
    %380 = vector.broadcast %379 : f32 to vector<2x16x16xf32>
    %381 = arith.mulf %224, %380 : vector<2x16x16xf32>
    %382 = arith.addf %378, %381 : vector<2x16x16xf32>
    %383 = vector.shape_cast %382 : vector<2x16x16xf32> to vector<2x1x16x16xf32>
    %c0_208 = arith.constant 0 : index
    %c7_209 = arith.constant 7 : index
    %c0_210 = arith.constant 0 : index
    %c0_211 = arith.constant 0 : index
    %384 = vector.load %arg6[%c0_208, %c7_209, %c0_210, %c0_211] : memref<2x8x16x16xf32, #tpu.memory_space<vmem>>, vector<2x1x16x16xf32>
    tpu.vector_store %arg6[%c0_208, %c7_209, %c0_210, %c0_211], %383 {strides = array<i32>} : memref<2x8x16x16xf32, #tpu.memory_space<vmem>>, vector<2x1x16x16xf32>,
    return
  }
  func.func @transform_0(%arg0: i32) -> (i32, i32, i32, i32) {
    %c0_i32 = arith.constant 0 : i32
    %c0_i32_0 = arith.constant 0 : i32
    %c0_i32_1 = arith.constant 0 : i32
    %c0_i32_2 = arith.constant 0 : i32
    return %arg0, %c0_i32, %c0_i32_0, %c0_i32_1 : i32, i32, i32, i32
  }
  func.func @transform_1(%arg0: i32) -> (i32, i32, i32) {
    %c0_i32 = arith.constant 0 : i32
    %c0_i32_0 = arith.constant 0 : i32
    %c0_i32_1 = arith.constant 0 : i32
    %c0_i32_2 = arith.constant 0 : i32
    return %c0_i32, %c0_i32_0, %c0_i32_1 : i32, i32, i32
  }
  func.func @transform_2(%arg0: i32) -> i32 {
    %c0_i32 = arith.constant 0 : i32
    %c0_i32_0 = arith.constant 0 : i32
    return %c0_i32 : i32
  }
  func.func @transform_3(%arg0: i32) -> (i32, i32) {
    %c0_i32 = arith.constant 0 : i32
    %c0_i32_0 = arith.constant 0 : i32
    %c0_i32_1 = arith.constant 0 : i32
    return %c0_i32, %c0_i32_0 : i32, i32
  }
  func.func @transform_4(%arg0: i32) -> i32 {
    %c0_i32 = arith.constant 0 : i32
    %c0_i32_0 = arith.constant 0 : i32
    return %c0_i32 : i32
  }
  func.func @transform_5(%arg0: i32) -> (i32, i32, i32, i32) {
    %c0_i32 = arith.constant 0 : i32
    %c0_i32_0 = arith.constant 0 : i32
    %c0_i32_1 = arith.constant 0 : i32
    %c0_i32_2 = arith.constant 0 : i32
    return %arg0, %c0_i32, %c0_i32_0, %c0_i32_1 : i32, i32, i32, i32
  }
}

</mosaic_0001>

<bundles_post_ra>
// kernel: tpu_custom_call.1
= control target key start
LH: loop header
LB: loop body
LE: loop exit
PB: predicated region body
PF: predicated region fallthrough
CT: control target
= control target key end

     0   :  { %s3970_s0 = inlined_call_operand.vmem [shape: f32[4,4,18,18], index: 0, kind: input, shape index: {}]   ;;  %s3971_s1 = inlined_call_operand.vmem [shape: f32[4,3,3], index: 1, kind: input, shape index: {}]   ;;  %s3972_s2 = inlined_call_operand.vmem [shape: f32[4], index: 2, kind: input, shape index: {}]   ;;  %s3973_s3 = inlined_call_operand.vmem [shape: f32[8,4], index: 3, kind: input, shape index: {}]   ;;  %s3974_s4 = inlined_call_operand.vmem [shape: f32[8], index: 4, kind: input, shape index: {}]   ;;  %s3975_s5 = inlined_call_operand.hbm [shape: f32[4,8,16,16], index: 5, kind: output, shape index: {}]  }
   0x1   :  { %3993 = sst [smem:[#allocation53_spill]] %s3970_s0 }
   0x2   :  { %3994 = sst [smem:[#allocation54_spill]] %s3971_s1 }
   0x3   :  { %10 = vsyncpa [#allocation4], 0 }
   0x4   :  { %11 = vsyncpa [#allocation6], 0 }
   0x5   :  { %12 = vsyncpa [#allocation9], 0 }
   0x6   :  { %13 = vsyncpa [#allocation3], 0 }
   0x7   :  { %15 = vsyncpa [#allocation3 + $0x1], 0  ;;  %s2359_s18 = smov 0   ;;  %s2361_s19 = smov 0  }
   0x8   :  { %s2363_s20 = smov 0   ;;  %s2365_s21 = smov 0  }
   0x9 LB: > { %s2380_s22 = sadd.s32 4294967295, %s2316_s21   ;;  %s1955_s23 = sadd.s32 4294967294, %s2316_s21   ;;  %s2316_s21 = sphi %s2365_s21, %s4119_s21   ;;  %s2312_s20 = sphi %s2363_s20, %s4118_s20   ;;  %s2308_s19 = sphi %s2361_s19, %s4117_s19   ;;  %s2304_s18 = sphi %s2359_s18, %s4116_s18  }
   0xa   : > { %s2384_s24 = sadd.s32 1, %s2316_s21   ;;  %s138_s25 = sadd.s32 1, %s2312_s20 }
   0xb   : > { %s135_s26 = ssub.s32 %s2316_s21, %s2384_s24  ;;  %p148_p0 = scmp.ne.s32.totalorder %s2312_s20, %s2308_s19 }
   0xc   : > { %p136_p1 = scmp.eq.s32.totalorder %s135_s26, 0  ;;  %p149_p2 = scmp.eq.s32.totalorder %s2380_s22, 1 }
   0xd   : > { %p154_p3 = scmp.ne.s32.totalorder %s2308_s19, %s2304_s18  ;;  %p155_p4 = scmp.eq.s32.totalorder %s1955_s23, 1 }
   0xe   : > { %s2395_s27 = scalar_select %p136_p1, %s2312_s20, %s138_s25  }
   0xf   : > { %p2397_p5 = por %p149_p2, %p148_p0  ;;  %p2401_p6 = por %p155_p4, %p154_p3 }
  0x10   : > { %p1956_p7 = scmp.ge.s32.totalorder %s2316_s21, 1  ;;  %p162_p8 = scmp.lt.s32.totalorder %s2316_s21, 3 }
  0x11   : > { %s3995_s28 = scalar_select %p2397_p5, 1, 0 }
  0x12   : > { %s3996_s29 = scalar_select %p2401_p6, 1, 0 }
  0x13   : > { %p3976_p9 = scmp.eq.s32.totalorder %s2380_s22, 0  ;;  %p2408_p10 = pnand %p1956_p7, %p162_p8 }
  0x14   : > { %s188_s8 = sshll.u32 %s3972_s2, 4  ;;  %s3998_s1 = sld [smem:[#allocation54_spill]]  ;;  %s189_s8 = int_to_ptr.vmem [resolvable:$true] %s188_s8 }
  0x15   : > { %s3997_s30 = scalar_select %p2408_p10, 1, 0 }
  0x16   : > { %p2101_p11 = pneg %p2408_p10  ;;  %s199_s15 = sshll.u32 %s3973_s3, 4  ;;  %s2431_s15 = int_to_ptr.vmem [resolvable:$true] %s199_s15 }
  0x17   : > { %s2182_s16 = scalar_lea.vmem %s189_s8, 16  ;;  %p2190_p3 = scmp.lt.s32.totalorder %s189_s8, %s189_s8 }
  0x18   : > { %p2424_p12 = pnand %p3976_p9, %p2101_p11  ;;  %p2183_p13 = scmp.ne.s32.totalorder %s189_s8, %s2182_s16 }
  0x19   : > { %p2191_p4 = scmp.lt.s32.totalorder %s2182_s16, %s2182_s16 }
  0x1a   : > { %s174_s11 = sshll.u32 %s3998_s1, 4  ;;  %p2184_p0 = pneg %p2424_p12  ;;  %s2420_s11 = int_to_ptr.vmem [resolvable:$true] %s174_s11 }
  0x1b   : > { %p2192_p7 = por %p2191_p4, %p2190_p3 }
  0x1c   : > { %p2185_p1 = pnand %p2184_p0, %p2183_p13 }
  0x1e   : > { %p2186_p2 = pneg %p2185_p1 }
  0x20   : > { %p2193_p8 = pnand %p2192_p7, %p2186_p2 }
  0x22   : > { %2196 = shalt.err (!%p2193_p8)
}
  0x23   : > { %s2318_s17 = smov [#allocation5]   ;;  %s2197_s23 = scalar_lea.vmem %s2420_s11, 256 }
  0x24   : > { %2107 = dma.vmem_to_smem (!%p2424_p12), %s189_s8, 16, %s2318_s17, [#allocation6]  }
  0x25   : > { %p2198_p11 = scmp.ne.s32.totalorder %s2420_s11, %s2197_s23  ;;  %p2205_p1 = scmp.lt.s32.totalorder %s2420_s11, %s2420_s11 }
  0x26   : > { %p2206_p6 = scmp.lt.s32.totalorder %s2197_s23, %s2197_s23 }
  0x27   : > { %p2200_p9 = pnand %p2198_p11, %p2184_p0 }
  0x28   : > { %p2207_p3 = por %p2206_p6, %p2205_p1 }
  0x29   : > { %p2201_p13 = pneg %p2200_p9 }
  0x2b   : > { %p2208_p2 = pnand %p2207_p3, %p2201_p13 }
  0x2d   : > { %2211 = shalt.err (!%p2208_p2)
}
  0x2e   : > { %s2319_s25 = smov [#allocation2]   ;;  %s2320_s26 = smov 64  }
  0x2f   : > { %s2321_s6 = smov 4   ;;  %s210_s9 = sshll.u32 %s3974_s4, 4  ;;  %s211_s9 = int_to_ptr.vmem [resolvable:$true] %s210_s9 }
  0x30   : > { %2104 = dma.vmem_to_smem (!%p2424_p12), %s2420_s11, 256, %s2319_s25, [#allocation4], %s2320_s26, %s2320_s26, %s2321_s6  }
  0x31   : > { %s2212_s10 = scalar_lea.vmem %s2431_s15, 128  ;;  %p2220_p7 = scmp.lt.s32.totalorder %s2431_s15, %s2431_s15 }
  0x32   : > { %p2213_p9 = scmp.ne.s32.totalorder %s2431_s15, %s2212_s10  ;;  %p2221_p8 = scmp.lt.s32.totalorder %s2212_s10, %s2212_s10 }
  0x34   : > { %p2215_p6 = pnand %p2213_p9, %p2184_p0  ;;  %p2222_p11 = por %p2221_p8, %p2220_p7 }
  0x36   : > { %p2216_p4 = pneg %p2215_p6 }
  0x38   : > { %p2223_p13 = pnand %p2222_p11, %p2216_p4 }
  0x3a   : > { %2226 = shalt.err (!%p2223_p13)
}
  0x3b   : > { %s2322_s13 = smov [#allocation7]   ;;  %s2227_s11 = scalar_lea.vmem %s211_s9, 16 }
  0x3c   : > { %2110 = dma.vmem_to_smem (!%p2424_p12), %s2431_s15, 128, %s2322_s13, [#allocation6]  }
  0x3d   : > { %p2228_p1 = scmp.ne.s32.totalorder %s211_s9, %s2227_s11  ;;  %p2235_p9 = scmp.lt.s32.totalorder %s211_s9, %s211_s9 }
  0x3e   : > { %p2236_p6 = scmp.lt.s32.totalorder %s2227_s11, %s2227_s11 }
  0x3f   : > { %p2230_p3 = pnand %p2228_p1, %p2184_p0 }
  0x40   : > { %p2237_p5 = por %p2236_p6, %p2235_p9 }
  0x41   : > { %p2231_p2 = pneg %p2230_p3 }
  0x43   : > { %p2238_p10 = pnand %p2237_p5, %p2231_p2 }
  0x45   : > { %2241 = shalt.err (!%p2238_p10)
}
  0x46   : > { %s2323_s14 = smov [#allocation8]   ;;  %p4000_p4 = scmp.ne.s32.totalorder %s3997_s30, 0 }
  0x47   : > { %2113 = dma.vmem_to_smem (!%p2424_p12), %s211_s9, 16, %s2323_s14, [#allocation9]  }
  0x48   : > { %233 = sbr.rel (%p4000_p4) target bundleno = 447 (0x1bf), region = 40 }
  0x4f   : > { %p4001_p7 = scmp.eq.s32.totalorder %s2380_s22, 0 }
  0x51   : > { %2287 = dma.done.wait (%p4001_p7), [#allocation4], 256   ;;  %p4002_p8 = pmov %p4001_p7 }
  0x52   : > { %p4003_p0 = pmov %p4001_p7 }
  0x53   : > { %2289 = vsyncadd (%p4002_p8), [#allocation4], 4294967040 }
  0x54   : > { %2291 = dma.done.wait (%p4003_p0), [#allocation6], 144   ;;  %p4004_p11 = pmov %p4003_p0 }
  0x55   : > { %p4005_p5 = pmov %p4003_p0 }
  0x56   : > { %2293 = vsyncadd (%p4004_p11), [#allocation6], 4294967152 }
  0x57   : > { %2295 = dma.done.wait (%p4005_p5), [#allocation9], 16   ;;  %p4006_p10 = pmov %p4003_p0 }
  0x59   : > { %2297 = vsyncadd (%p4006_p10), [#allocation9], 4294967280 }
  0x5a   : > { %251 = sfence }
  0x5b   : > { %s1968_s30 = sshll.u32 %s2380_s22, 1  ;;  %s1970_s12 = sld [smem:[#allocation2 + $0x1]]  ;;  %vm385_vm0 = vcmask 1046528   ;;  %vm498_vm1 = vcmask 1045504   ;;  %vm1503_vm2 = vcmask 130048  }
  0x5c   : > { %p276_p12 = scmp.lt.s32.totalorder %s1968_s30, 3  ;;  %s1971_s15 = sld [smem:[#allocation2 + $0x2]] }
  0x5d   : > { %s1973_s17 = sld [smem:[#allocation2 + $0x81]]  ;;  %s4007_s0 = sld [smem:[#allocation53_spill]] }
  0x5e   : > { %s4121_s30 = smov (!%p276_p12, %s1968_s30), 3  ;;  %s3979_s6 = smov 127  }
  0x5f   : > { %s2082_s16 = smul.u32 96, %s4121_s30  ;;  %s1974_s7 = sld [smem:[#allocation2 + $0x82]] }
  0x60   : > { %s3981_s8 = smov 126   ;;  %s1976_s9 = sld [smem:[#allocation2 + $0x101]] }
  0x61   : > { %v320_v0 = vstv %s1970_s12  ;;  %s1977_s10 = sld [smem:[#allocation2 + $0x102]]  ;;  %s1980_s13 = sld [smem:[#allocation2 + $0x201]] }
  0x62   : > { %v346_v9 = vstv %s1971_s15  ;;  %s1972_s11 = sld [smem:[#allocation2 + $0x80]]  ;;  %s1981_s14 = sld [smem:[#allocation2 + $0x202]] }
  0x63   : > { %s2486_s26 = scalar_lea.vmem %s4007_s0, %s2082_s16  ;;  %v405_v11 = vstv %s1973_s17  ;;  %s1983_s30 = sld [smem:[#allocation2 + $0x281]] }
  0x64   : > { %v2489_v1 = vld [vmem:[%s2486_s26 + $0x60] sm:$0xff]  ;;  %v2495_v3 = vld [vmem:[%s2486_s26 + $0x68] sm:$0xff]  ;;  %v2507_v10 = vld [vmem:[%s2486_s26 + $0x10] sm:$0x3]  ;;  %s1984_s12 = sld [smem:[#allocation2 + $0x282]]  ;;  %s1975_s15 = sld [smem:[#allocation2 + $0x100]] }
  0x65   : > { %v2492_v2 = vld [vmem:[%s2486_s26] sm:$0xff]  ;;  %v323_v4 = vmul.f32 %v320_v0, %v2489_v1  ;;  %v2500_v6 = vld [vmem:[%s2486_s26 + $0x8] sm:$0xff]  ;;  %v324_v7 = vmul.f32 %v320_v0, %v2495_v3  ;;  %v408_v15 = vmul.f32 %v405_v11, %v2507_v10  ;;  %v2517_v17 = vld [vmem:[%s2486_s26 + $0x70] sm:$0x3]  ;;  %v350_v18 = vmul.f32 %v346_v9, %v2495_v3  ;;  %s1986_s16 = sld [smem:[#allocation2 + $0x301]]  ;;  %s1987_s17 = sld [smem:[#allocation2 + $0x302]] }
  0x66   : > { %v321_v5 = vmul.f32 %v320_v0, %v2492_v2  ;;  %v322_v8 = vmul.f32 %v320_v0, %v2500_v6  ;;  %v348_v12 = vmul.f32 %v346_v9, %v2500_v6  ;;  %v347_v13 = vmul.f32 %v346_v9, %v2492_v2  ;;  %s1990_s23 = sld [smem:[#allocation2 + $0x401]]  ;;  %s1991_s25 = sld [smem:[#allocation2 + $0x402]] }
  0x67   : > { %333 = vrot.lane.b32.xlu1 %v323_v4, %s3979_s6  ;;  %v407_v14 = vmul.f32 %v405_v11, %v2500_v6  ;;  %v406_v16 = vmul.f32 %v405_v11, %v2492_v2  ;;  %v349_v19 = vmul.f32 %v346_v9, %v2489_v1  ;;  %v410_v20 = vmul.f32 %v405_v11, %v2495_v3  ;;  %s2885_s0 = sld [smem:[#allocation8 + $0x7]]  ;;  %s4010_s1 = smov 126  }
  0x68   : > { %329 = vrot.lane.b32.xlu0 %v321_v5, %s3979_s6  ;;  %v411_v21 = vmul.f32 %v405_v11, %v2517_v17  ;;  %v409_v22 = vmul.f32 %v405_v11, %v2489_v1  ;;  %v445_v23 = vstv %s1974_s7  ;;  %v421_v25 = vrot.slane %v408_v15, 1  ;;  %s1993_s7 = sld [smem:[#allocation2 + $0x481]]  ;;  %p4114_p1 = scmp.ne.s32.totalorder %s3995_s28, 0 }
  0x69   : > { %v419_v24 = vrot.slane %v407_v14, 1  ;;  %v418_v26 = vrot.slane %v406_v16, 1  ;;  %v447_v27 = vmul.f32 %v445_v23, %v2500_v6  ;;  %v448_v28 = vmul.f32 %v445_v23, %v2507_v10 }
  0x6a   : > { %v424_v29 = vrot.slane %v410_v20, 1  ;;  %v426_v30 = vrot.slane %v411_v21, 1  ;;  %v423_v31 = vrot.slane %v409_v22, 1  ;;  %v446_v34 = vmul.f32 %v445_v23, %v2492_v2 }
  0x6b   : > { %335 = vrot.lane.b32.xlu1 %v324_v7, %s3979_s6  ;;  %v422_v32 = vsel %vm385_vm0, %v419_v24, %v421_v25  ;;  %v420_v33 = vsel %vm385_vm0, %v418_v26, %v419_v24  ;;  %v459_v35 = vrot.slane %v447_v27, 1  ;;  %v461_v36 = vrot.slane %v448_v28, 1  ;;  %v2577_v26 = vld [vmem:[%s2486_s26 + $0x20] sm:$0xff]  ;;  %v2580_v28 = vld [vmem:[%s2486_s26 + $0x18] sm:$0xff] }
  0x6c   : > { %331 = vrot.lane.b32.xlu0 %v322_v8, %s3979_s6  ;;  %v427_v37 = vsel %vm385_vm0, %v424_v29, %v426_v30  ;;  %v425_v38 = vsel %vm385_vm0, %v423_v31, %v424_v29  ;;  %v450_v39 = vmul.f32 %v445_v23, %v2495_v3  ;;  %v458_v40 = vrot.slane %v446_v34, 1 }
  0x6d   : > { %v451_v41 = vmul.f32 %v445_v23, %v2517_v17  ;;  %v449_v42 = vmul.f32 %v445_v23, %v2489_v1  ;;  %v518_v43 = vstv %s1976_s9  ;;  %v462_v44 = vsel %vm385_vm0, %v459_v35, %v461_v36  ;;  %s309_s9 = sld [smem:[#allocation2]] }
  0x6e   : > { %v520_v45 = vmul.f32 %v518_v43, %v2500_v6  ;;  %v521_v46 = vmul.f32 %v518_v43, %v2507_v10  ;;  %v519_v47 = vmul.f32 %v518_v43, %v2492_v2  ;;  %v460_v48 = vsel %vm385_vm0, %v458_v40, %v459_v35  ;;  %v2605_v40 = vld [vmem:[%s2486_s26 + $0x28] sm:$0x3] }
  0x6f   : > { %357 = vrot.lane.b32.xlu1 %v348_v12, %s3981_s8  ;;  %v464_v49 = vrot.slane %v450_v39, 1  ;;  %v466_v50 = vrot.slane %v451_v41, 1  ;;  %v463_v51 = vrot.slane %v449_v42, 1  ;;  %v523_v52 = vmul.f32 %v518_v43, %v2495_v3 }
  0x70   : > { %355 = vrot.lane.b32.xlu0 %v347_v13, %s3981_s8  ;;  %v524_v53 = vmul.f32 %v518_v43, %v2517_v17  ;;  %v532_v54 = vrot.slane %v520_v45, 2  ;;  %v534_v55 = vrot.slane %v521_v46, 2  ;;  %v531_v56 = vrot.slane %v519_v47, 2 }
  0x71   : > { %v467_v57 = vsel %vm385_vm0, %v464_v49, %v466_v50  ;;  %v465_v58 = vsel %vm385_vm0, %v463_v51, %v464_v49  ;;  %v522_v59 = vmul.f32 %v518_v43, %v2489_v1  ;;  %v558_v60 = vstv %s1977_s10  ;;  %s2000_s10 = sld [smem:[#allocation2 + $0x601]] }
  0x72   : > { %v537_v61 = vrot.slane %v523_v52, 2  ;;  %v539_v62 = vrot.slane %v524_v53, 2  ;;  %v535_v63 = vsel %vm498_vm1, %v532_v54, %v534_v55  ;;  %v533_v0 = vsel %vm498_vm1, %v531_v56, %v532_v54  ;;  %v2621_v52 = vld [vmem:[%s2486_s26 + $0x88] sm:$0x3] }
  0x73   : > { %361 = vrot.lane.b32.xlu1 %v350_v18, %s3981_s8  ;;  %v536_v4 = vrot.slane %v522_v59, 2  ;;  %v560_v5 = vmul.f32 %v558_v60, %v2500_v6  ;;  %v561_v7 = vmul.f32 %v558_v60, %v2507_v10  ;;  %v559_v8 = vmul.f32 %v558_v60, %v2492_v2 }
  0x74   : > { %359 = vrot.lane.b32.xlu0 %v349_v19, %s3981_s8  ;;  %v540_v9 = vsel %vm498_vm1, %v537_v61, %v539_v62  ;;  %v563_v11 = vmul.f32 %v558_v60, %v2495_v3  ;;  %v564_v12 = vmul.f32 %v558_v60, %v2517_v17  ;;  %v562_v13 = vmul.f32 %v558_v60, %v2489_v1 }
  0x75   : > { %v538_v14 = vsel %vm498_vm1, %v536_v4, %v537_v61  ;;  %v572_v15 = vrot.slane %v560_v5, 2  ;;  %v574_v16 = vrot.slane %v561_v7, 2  ;;  %v571_v18 = vrot.slane %v559_v8, 2 }
  0x76   : > { %v577_v19 = vrot.slane %v563_v11, 2  ;;  %v579_v22 = vrot.slane %v564_v12, 2  ;;  %v576_v23 = vrot.slane %v562_v13, 2  ;;  %v610_v27 = vstv %s1980_s13  ;;  %s307_s13 = sld [smem:[#allocation5]] }
  0x77   : > { %430 = vrot.lane.b32.xlu1 %v422_v32, %s3979_s6  ;;  %v575_v20 = vsel %vm498_vm1, %v572_v15, %v574_v16  ;;  %v573_v21 = vsel %vm498_vm1, %v571_v18, %v572_v15  ;;  %v612_v29 = vmul.f32 %v610_v27, %v2577_v26  ;;  %v611_v30 = vmul.f32 %v610_v27, %v2580_v28  ;;  %v2589_v32 = vld [vmem:[%s2486_s26 + $0x80] sm:$0xff] }
  0x78   : > { %428 = vrot.lane.b32.xlu0 %v420_v33, %s3979_s6  ;;  %v580_v24 = vsel %vm498_vm1, %v577_v19, %v579_v22  ;;  %v578_v25 = vsel %vm498_vm1, %v576_v23, %v577_v19  ;;  %v2586_v31 = vstv %s1972_s11  ;;  %v2592_v33 = vld [vmem:[%s2486_s26 + $0x78] sm:$0xff]  ;;  %v614_v36 = vmul.f32 %v610_v27, %v2589_v32  ;;  %s2001_s11 = sld [smem:[#allocation2 + $0x602]] }
  0x79   : > { %v374_v34 = vmul.f32 %v2586_v31, %v2500_v6  ;;  %v375_v35 = vmul.f32 %v2586_v31, %v2507_v10  ;;  %v373_v39 = vmul.f32 %v2586_v31, %v2492_v2  ;;  %v694_v41 = vstv %s1983_s30  ;;  %s2766_s30 = sld [smem:[#allocation2 + $0x681]] }
  0x7a   : > { %v697_v49 = vmul.f32 %v694_v41, %v2605_v40  ;;  %v695_v51 = vmul.f32 %v694_v41, %v2580_v28  ;;  %v699_v55 = vmul.f32 %v694_v41, %v2589_v32  ;;  %v734_v56 = vstv %s1984_s12  ;;  %s2799_s12 = sld [smem:[#allocation2 + $0x682]] }
  0x7b   : > { %434 = vrot.lane.b32.xlu1 %v427_v37, %s3979_s6  ;;  %v613_v37 = vmul.f32 %v610_v27, %v2592_v33  ;;  %v387_v42 = vrot.slane %v374_v34, 1  ;;  %v389_v43 = vrot.slane %v375_v35, 1  ;;  %v700_v59 = vmul.f32 %v694_v41, %v2621_v52 }
  0x7c   : > { %432 = vrot.lane.b32.xlu0 %v425_v38, %s3979_s6  ;;  %v636_v38 = vstv %s1981_s14  ;;  %v698_v60 = vmul.f32 %v694_v41, %v2592_v33  ;;  %v707_v61 = vrot.slane %v695_v51, 1  ;;  %v2630_v62 = vstv %s1975_s15  ;;  %s2748_s14 = sld [smem:[#allocation2 + $0x482]]  ;;  %s2817_s15 = sld [smem:[#allocation7]] }
  0x7d   : > { %v638_v45 = vmul.f32 %v636_v38, %v2577_v26  ;;  %v637_v46 = vmul.f32 %v636_v38, %v2580_v28  ;;  %v2610_v47 = vsel %vm385_vm0, %v387_v42, %v389_v43  ;;  %v640_v53 = vmul.f32 %v636_v38, %v2589_v32 }
  0x7e   : > { %v639_v54 = vmul.f32 %v636_v38, %v2592_v33  ;;  %v737_v4 = vmul.f32 %v734_v56, %v2605_v40  ;;  %v487_v5 = vmul.f32 %v2630_v62, %v2500_v6  ;;  %v488_v7 = vmul.f32 %v2630_v62, %v2507_v10 }
  0x7f   : > { %470 = vrot.lane.b32.xlu1 %v462_v44, %s3981_s8  ;;  %v386_v44 = vrot.slane %v373_v39, 1  ;;  %v712_v11 = vrot.slane %v698_v60, 1  ;;  %v486_v12 = vmul.f32 %v2630_v62, %v2492_v2  ;;  %v740_v27 = vmul.f32 %v734_v56, %v2621_v52 }
  0x80   : > { %468 = vrot.lane.b32.xlu0 %v460_v48, %s3981_s8  ;;  %v696_v48 = vmul.f32 %v694_v41, %v2577_v26  ;;  %v500_v15 = vrot.slane %v487_v5, 2  ;;  %v502_v16 = vrot.slane %v488_v7, 2  ;;  %v750_v10 = vrot.slane %v737_v4, 1 }
  0x81   : > { %v2617_v50 = vsel %vm385_vm0, %v386_v44, %v387_v42  ;;  %v499_v18 = vrot.slane %v486_v12, 2  ;;  %v755_v41 = vrot.slane %v740_v27, 1 }
  0x83   : > { %474 = vrot.lane.b32.xlu1 %v467_v57, %s3981_s8  ;;  %v708_v57 = vrot.slane %v696_v48, 1 }
  0x84   : > { %472 = vrot.lane.b32.xlu0 %v465_v58, %s3981_s8  ;;  %v710_v58 = vrot.slane %v697_v49, 1 }
  0x85   : > { %v709_v13 = vsel %vm385_vm0, %v707_v61, %v708_v57 }
  0x86   : > { %v711_v8 = vsel %vm385_vm0, %v708_v57, %v710_v58 }
  0x87   : > { %543 = vrot.lane.b32.xlu1 %v535_v63, %s3979_s6  ;;  %v736_v63 = vmul.f32 %v734_v56, %v2577_v26 }
  0x88   : > { %541 = vrot.lane.b32.xlu0 %v533_v0, %s3979_s6  ;;  %v713_v0 = vrot.slane %v699_v55, 1 }
  0x89   : > { %v748_v19 = vrot.slane %v736_v63, 1 }
  0x8a   : > { %v714_v23 = vsel %vm385_vm0, %v712_v11, %v713_v0 }
  0x8b   : > { %547 = vrot.lane.b32.xlu1 %v540_v9, %s3979_s6  ;;  %v715_v9 = vrot.slane %v700_v59, 1  ;;  %v751_v34 = vsel %vm385_vm0, %v748_v19, %v750_v10 }
  0x8c   : > { %545 = vrot.lane.b32.xlu0 %v538_v14, %s3979_s6  ;;  %v735_v14 = vmul.f32 %v734_v56, %v2580_v28 }
  0x8d   : > { %v716_v22 = vsel %vm385_vm0, %v713_v0, %v715_v9 }
  0x8f   : > { %583 = vrot.lane.b32.xlu1 %v575_v20, %s3981_s8  ;;  %v739_v20 = vmul.f32 %v734_v56, %v2589_v32 }
  0x90   : > { %581 = vrot.lane.b32.xlu0 %v573_v21, %s3981_s8  ;;  %v2647_v21 = vsel %vm498_vm1, %v500_v15, %v502_v16 }
  0x91   : > { %v753_v39 = vrot.slane %v739_v20, 1  ;;  %v2695_v20 = vld [vmem:[%s2486_s26 + $0x38] sm:$0xff] }
  0x93   : > { %587 = vrot.lane.b32.xlu1 %v580_v24, %s3981_s8  ;;  %v2654_v24 = vsel %vm498_vm1, %v499_v18, %v500_v15  ;;  %v756_v49 = vsel %vm385_vm0, %v753_v39, %v755_v41 }
  0x94   : > { %585 = vrot.lane.b32.xlu0 %v578_v25, %s3981_s8  ;;  %v747_v25 = vrot.slane %v735_v14, 1 }
  0x96   : > { %v749_v38 = vsel %vm385_vm0, %v747_v25, %v748_v19 }
  0x97   : > { %621 = vrot.lane.b32.xlu1 %v612_v29, %s3979_s6  ;;  %v738_v29 = vmul.f32 %v734_v56, %v2592_v33 }
  0x98   : > { %619 = vrot.lane.b32.xlu0 %v611_v30, %s3979_s6  ;;  %v806_v30 = vstv %s1986_s16  ;;  %s2824_s16 = sld [smem:[#allocation8]] }
  0x99   : > { %v808_v35 = vmul.f32 %v806_v30, %v2577_v26  ;;  %v752_v42 = vrot.slane %v738_v29, 1  ;;  %v811_v43 = vmul.f32 %v806_v30, %v2589_v32  ;;  %v812_v44 = vmul.f32 %v806_v30, %v2621_v52  ;;  %v2705_v29 = vld [vmem:[%s2486_s26 + $0x98] sm:$0xff] }
  0x9b   : > { %625 = vrot.lane.b32.xlu1 %v614_v36, %s3979_s6  ;;  %v809_v36 = vmul.f32 %v806_v30, %v2605_v40  ;;  %v754_v51 = vsel %vm385_vm0, %v752_v42, %v753_v39  ;;  %v825_v55 = vrot.slane %v811_v43, 2  ;;  %v827_v56 = vrot.slane %v812_v44, 2 }
  0x9c   : > { %623 = vrot.lane.b32.xlu0 %v613_v37, %s3979_s6  ;;  %v807_v37 = vmul.f32 %v806_v30, %v2580_v28 }
  0x9d   : > { %v828_v0 = vsel %vm498_vm1, %v825_v55, %v827_v56 }
  0x9e   : > { %v819_v48 = vrot.slane %v807_v37, 2  ;;  %v982_v37 = vstv %s1993_s7  ;;  %s2839_s7 = sld [smem:[#allocation8 + $0x2]] }
  0x9f   : > { %647 = vrot.lane.b32.xlu1 %v638_v45, %s3981_s8  ;;  %v820_v45 = vrot.slane %v808_v35, 2  ;;  %v2720_v42 = vmul.f32 %v982_v37, %v2695_v20 }
  0xa0   : > { %645 = vrot.lane.b32.xlu0 %v637_v46, %s3981_s8  ;;  %v822_v46 = vrot.slane %v809_v36, 2  ;;  %v924_v36 = vstv %s1991_s25  ;;  %s2834_s25 = sld [smem:[#allocation7 + $0x100]] }
  0xa1   : > { %v821_v58 = vsel %vm498_vm1, %v819_v48, %v820_v45  ;;  %v928_v43 = vmul.f32 %v924_v36, %v2705_v29  ;;  %v1186_v48 = vstv %s2000_s10  ;;  %s2846_s10 = sld [smem:[#allocation2 + $0x501]] }
  0xa2   : > { %v823_v57 = vsel %vm498_vm1, %v820_v45, %v822_v46  ;;  %v310_v45 = vstv %s309_s9  ;;  %v2727_v46 = vld [vmem:[%s2486_s26 + $0x48] sm:$0xff]  ;;  %s2844_s9 = sld [smem:[#allocation8 + $0x3]] }
  0xa3   : > { %651 = vrot.lane.b32.xlu1 %v640_v53, %s3981_s8  ;;  %v810_v53 = vmul.f32 %v806_v30, %v2592_v33  ;;  %v2708_v30 = vld [vmem:[%s2486_s26 + $0x90] sm:$0xff] }
  0xa4   : > { %649 = vrot.lane.b32.xlu0 %v639_v54, %s3981_s8  ;;  %v846_v54 = vstv %s1987_s17  ;;  %v927_v44 = vmul.f32 %v924_v36, %v2708_v30  ;;  %s2826_s17 = sld [smem:[#allocation8 + $0x1]] }
  0xa5   : > { %v824_v59 = vrot.slane %v810_v53, 2  ;;  %v848_v60 = vmul.f32 %v846_v54, %v2577_v26  ;;  %v849_v61 = vmul.f32 %v846_v54, %v2605_v40  ;;  %v847_v63 = vmul.f32 %v846_v54, %v2580_v28 }
  0xa6   : > { %v851_v4 = vmul.f32 %v846_v54, %v2589_v32  ;;  %v852_v5 = vmul.f32 %v846_v54, %v2621_v52  ;;  %v850_v7 = vmul.f32 %v846_v54, %v2592_v33  ;;  %v311_v53 = vmul.f32 %v310_v45, %v2492_v2 }
  0xa7   : > { %719 = vrot.lane.b32.xlu1 %v711_v8, %s3979_s6  ;;  %v826_v8 = vsel %vm498_vm1, %v824_v59, %v825_v55  ;;  %v860_v9 = vrot.slane %v848_v60, 2  ;;  %v862_v11 = vrot.slane %v849_v61, 2  ;;  %v859_v12 = vrot.slane %v847_v63, 2  ;;  %v2742_v59 = vld [vmem:[%s2486_s26 + $0x40] sm:$0x3] }
  0xa8   : > { %717 = vrot.lane.b32.xlu0 %v709_v13, %s3979_s6  ;;  %v865_v13 = vrot.slane %v851_v4, 2  ;;  %v867_v16 = vrot.slane %v852_v5, 2  ;;  %v864_v18 = vrot.slane %v850_v7, 2  ;;  %v1187_v54 = vmul.f32 %v1186_v48, %v2727_v46  ;;  %v2745_v60 = vld [vmem:[%s2486_s26 + $0xa0] sm:$0x3]  ;;  %v2755_v5 = vld [vmem:[%s2486_s26 + $0xb0] sm:$0xff] }
  0xa9   : > { %v863_v14 = vsel %vm498_vm1, %v860_v9, %v862_v11  ;;  %v861_v15 = vsel %vm498_vm1, %v859_v12, %v860_v9  ;;  %v308_v55 = vstv %s307_s13  ;;  %v312_v2 = vmul.f32 %v310_v45, %v2500_v6  ;;  %s2849_s13 = sld [smem:[#allocation7 + $0x180]] }
  0xaa   : > { %v868_v19 = vsel %vm498_vm1, %v865_v13, %v867_v16  ;;  %v866_v10 = vsel %vm498_vm1, %v864_v18, %v865_v13  ;;  %v315_v61 = vadd.f32 %v311_v53, %v308_v55  ;;  %v1212_v4 = vstv %s2001_s11  ;;  %s2851_s11 = sld [smem:[#allocation8 + $0x4]] }
  0xab   : > { %723 = vrot.lane.b32.xlu1 %v716_v22, %s3979_s6  ;;  %v898_v22 = vstv %s1990_s23  ;;  %v985_v7 = vmul.f32 %v982_v37, %v2742_v59  ;;  %v988_v9 = vmul.f32 %v982_v37, %v2745_v60  ;;  %v313_v12 = vmul.f32 %v310_v45, %v2489_v1  ;;  %s2832_s23 = sld [smem:[#allocation7 + $0x80]] }
  0xac   : > { %721 = vrot.lane.b32.xlu0 %v714_v23, %s3979_s6  ;;  %v2698_v23 = vld [vmem:[%s2486_s26 + $0x30] sm:$0xff]  ;;  %v900_v25 = vmul.f32 %v898_v22, %v2695_v20  ;;  %v901_v35 = vmul.f32 %v898_v22, %v2708_v30  ;;  %v1190_v16 = vmul.f32 %v1186_v48, %v2755_v5  ;;  %v986_v18 = vmul.f32 %v982_v37, %v2708_v30 }
  0xad   : > { %v899_v27 = vmul.f32 %v898_v22, %v2698_v23  ;;  %v925_v39 = vmul.f32 %v924_v36, %v2698_v23  ;;  %v983_v41 = vmul.f32 %v982_v37, %v2698_v23 }
  0xaf   : > { %759 = vrot.lane.b32.xlu1 %v751_v34, %s3981_s8  ;;  %v902_v34 = vmul.f32 %v898_v22, %v2705_v29 }
  0xb0   : > { %757 = vrot.lane.b32.xlu0 %v749_v38, %s3981_s8  ;;  %v926_v38 = vmul.f32 %v924_v36, %v2695_v20  ;;  %v378_v36 = vmul.f32 %v2586_v31, %v2517_v17 }
  0xb3   : > { %763 = vrot.lane.b32.xlu1 %v756_v49, %s3981_s8  ;;  %v995_v49 = vrot.slane %v983_v41, 1  ;;  %v317_v41 = vadd.f32 %v313_v12, %v308_v55 }
  0xb4   : > { %761 = vrot.lane.b32.xlu0 %v754_v51, %s3981_s8  ;;  %v996_v51 = vrot.slane %v2720_v42, 1 }
  0xb6   : > { %v997_v56 = vsel %vm385_vm0, %v995_v49, %v996_v51  ;;  %v1216_v49 = vmul.f32 %v1212_v4, %v2755_v5 }
  0xb7   : > { %831 = vrot.lane.b32.xlu1 %v823_v57, %s3979_s6  ;;  %v2736_v57 = vld [vmem:[%s2486_s26 + $0xa8] sm:$0xff] }
  0xb8   : > { %829 = vrot.lane.b32.xlu0 %v821_v58, %s3979_s6  ;;  %v2739_v58 = vld [vmem:[%s2486_s26 + $0x50] sm:$0xff]  ;;  %v1189_v63 = vmul.f32 %v1186_v48, %v2736_v57  ;;  %v1215_v42 = vmul.f32 %v1212_v4, %v2736_v57 }
  0xbb   : > { %835 = vrot.lane.b32.xlu1 %v828_v0, %s3979_s6  ;;  %v1188_v0 = vmul.f32 %v1186_v48, %v2739_v58 }
  0xbc   : > { %833 = vrot.lane.b32.xlu0 %v826_v8, %s3979_s6  ;;  %v987_v8 = vmul.f32 %v982_v37, %v2705_v29  ;;  %v1022_v37 = vstv %s2748_s14  ;;  %s2861_s14 = sld [smem:[#allocation7 + $0x200]] }
  0xbe   : > { %v1001_v22 = vrot.slane %v987_v8, 1 }
  0xbf   : > { %871 = vrot.lane.b32.xlu1 %v863_v14, %s3981_s8  ;;  %v316_v14 = vadd.f32 %v312_v2, %v308_v55  ;;  %v1024_v2 = vmul.f32 %v1022_v37, %v2695_v20 }
  0xc0   : > { %869 = vrot.lane.b32.xlu0 %v861_v15, %s3981_s8  ;;  %v1213_v15 = vmul.f32 %v1212_v4, %v2727_v46 }
  0xc3   : > { %875 = vrot.lane.b32.xlu1 %v868_v19, %s3981_s8  ;;  %v314_v19 = vmul.f32 %v310_v45, %v2495_v3 }
  0xc4   : > { %873 = vrot.lane.b32.xlu0 %v866_v10, %s3981_s8  ;;  %v998_v10 = vrot.slane %v985_v7, 1 }
  0xc5   : > { %v318_v45 = vadd.f32 %v314_v19, %v308_v55  ;;  %v1023_v55 = vmul.f32 %v1022_v37, %v2698_v23 }
  0xc6   : > { %v999_v48 = vsel %vm385_vm0, %v996_v51, %v998_v10 }
  0xc7   : > { %909 = vrot.lane.b32.xlu1 %v900_v25, %s3979_s6  ;;  %v1003_v25 = vrot.slane %v988_v9, 1  ;;  %v1028_v9 = vmul.f32 %v1022_v37, %v2745_v60 }
  0xc8   : > { %907 = vrot.lane.b32.xlu0 %v899_v27, %s3979_s6 }
  0xc9   : > { %v1004_v53 = vsel %vm385_vm0, %v1001_v22, %v1003_v25 }
  0xcb   : > { %913 = vrot.lane.b32.xlu1 %v902_v34, %s3979_s6 }
  0xcc   : > { %911 = vrot.lane.b32.xlu0 %v901_v35, %s3979_s6  ;;  %v377_v35 = vmul.f32 %v2586_v31, %v2495_v3 }
  0xcf   : > { %935 = vrot.lane.b32.xlu1 %v926_v38, %s3981_s8 }
  0xd0   : > { %933 = vrot.lane.b32.xlu0 %v925_v39, %s3981_s8  ;;  %v376_v39 = vmul.f32 %v2586_v31, %v2489_v1 }
  0xd2   : > { %v391_v8 = vrot.slane %v376_v39, 1 }
  0xd3   : > { %939 = vrot.lane.b32.xlu1 %v928_v43, %s3981_s8  ;;  %v1214_v43 = vmul.f32 %v1212_v4, %v2739_v58  ;;  %v2790_v4 = vmul.f32 %v1022_v37, %v2705_v29 }
  0xd4   : > { %937 = vrot.lane.b32.xlu0 %v927_v44, %s3981_s8  ;;  %v1000_v44 = vrot.slane %v986_v18, 1 }
  0xd6   : > { %v1002_v51 = vsel %vm385_vm0, %v1000_v44, %v1001_v22  ;;  %v1036_v22 = vrot.slane %v1024_v2, 1 }
  0xd7   : > { %1195 = vrot.lane.b32.xlu1 %v1187_v54, %s3979_s6 }
  0xd8   : > { %1005 = vrot.lane.b32.xlu0 %v997_v56, %s3979_s6  ;;  %v392_v56 = vrot.slane %v377_v35, 1  ;;  %v2806_v35 = vld [vmem:[%s2486_s26 + $0xb8] sm:$0x3] }
  0xd9   : > { %v334_v6 = vpop.permute.xlu1 %333 }
  0xda   : > { %v330_v11 = vpop.permute.xlu0 %329  ;;  %v343_v12 = vadd.f32 %v334_v6, %v317_v41 }
  0xdb   : > { %v341_v13 = vadd.f32 %v330_v11, %v315_v61  ;;  %1199 = vrot.lane.b32.xlu1 %v1189_v63, %s3979_s6  ;;  %v394_v61 = vrot.slane %v378_v36, 1  ;;  %v1025_v63 = vmul.f32 %v1022_v37, %v2742_v59  ;;  %v1270_v11 = vstv %s2766_s30  ;;  %s2863_s30 = sld [smem:[#allocation8 + $0x5]] }
  0xdc   : > { %1197 = vrot.lane.b32.xlu0 %v1188_v0, %s3979_s6  ;;  %v1041_v36 = vrot.slane %v2790_v4, 1  ;;  %v1276_v44 = vmul.f32 %v1270_v11, %v2806_v35 }
  0xdd   : > { %v336_v27 = vpop.permute.xlu1 %335  ;;  %v395_v10 = vsel %vm385_vm0, %v392_v56, %v394_v61  ;;  %v1038_v25 = vrot.slane %v1025_v63, 1  ;;  %v491_v63 = vmul.f32 %v2630_v62, %v2517_v17 }
  0xde   : > { %v332_v34 = vpop.permute.xlu0 %331 }
  0xdf   : > { %v342_v38 = vadd.f32 %v332_v34, %v316_v14  ;;  %1221 = vrot.lane.b32.xlu1 %v1213_v15, %s3981_s8  ;;  %v344_v14 = vadd.f32 %v336_v27, %v318_v45  ;;  %v2803_v34 = vmul.f32 %v1022_v37, %v2708_v30  ;;  %v1271_v37 = vmul.f32 %v1270_v11, %v2727_v46 }
  0xe0   : > { %1201 = vrot.lane.b32.xlu0 %v1190_v16, %s3979_s6  ;;  %v2797_v16 = vld [vmem:[%s2486_s26 + $0x58] sm:$0x3] }
  0xe1   : > { %v358_v31 = vpop.permute.xlu1 %357  ;;  %v1273_v39 = vmul.f32 %v1270_v11, %v2797_v16 }
  0xe2   : > { %v356_v54 = vpop.permute.xlu0 %355  ;;  %v368_v0 = vadd.f32 %v358_v31, %v342_v38  ;;  %v1272_v38 = vmul.f32 %v1270_v11, %v2739_v58  ;;  %v1040_v31 = vrot.slane %v2803_v34, 1 }
  0xe3   : > { %v367_v7 = vadd.f32 %v356_v54, %v341_v13  ;;  %1225 = vrot.lane.b32.xlu1 %v1215_v42, %s3981_s8  ;;  %v1043_v42 = vrot.slane %v1028_v9, 1  ;;  %v1274_v54 = vmul.f32 %v1270_v11, %v2736_v57  ;;  %v1291_v9 = vrot.slane %v1276_v44, 1 }
  0xe4   : > { %1223 = vrot.lane.b32.xlu0 %v1214_v43, %s3981_s8  ;;  %v401_v13 = vadd.f32 %v2610_v47, %v368_v0  ;;  %v393_v47 = vsel %vm385_vm0, %v391_v8, %v392_v56  ;;  %v1275_v43 = vmul.f32 %v1270_v11, %v2755_v5  ;;  %v490_v56 = vmul.f32 %v2630_v62, %v2495_v3 }
  0xe5   : > { %v400_v15 = vadd.f32 %v2617_v50, %v367_v7  ;;  %v362_v18 = vpop.permute.xlu1 %361  ;;  %v1035_v50 = vrot.slane %v1023_v55, 1  ;;  %v489_v0 = vmul.f32 %v2630_v62, %v2489_v1  ;;  %v1284_v7 = vrot.slane %v1272_v38, 1 }
  0xe6   : > { %v360_v19 = vpop.permute.xlu0 %359  ;;  %v370_v6 = vadd.f32 %v362_v18, %v344_v14  ;;  %v1286_v8 = vrot.slane %v1273_v39, 1  ;;  %v1283_v55 = vrot.slane %v1271_v37, 1  ;;  %v1289_v17 = vrot.slane %v1275_v43, 1 }
  0xe7   : > { %v369_v27 = vadd.f32 %v360_v19, %v343_v12  ;;  %1007 = vrot.lane.b32.xlu1 %v999_v48, %s3979_s6  ;;  %v1037_v3 = vsel %vm385_vm0, %v1035_v50, %v1036_v22  ;;  %v2842_v11 = vstv %s2799_s12  ;;  %v505_v12 = vrot.slane %v490_v56, 2  ;;  %s2869_s12 = sld [smem:[#allocation7 + $0x280]] }
  0xe8   : > { %1227 = vrot.lane.b32.xlu0 %v1216_v49, %s3981_s8  ;;  %v403_v41 = vadd.f32 %v395_v10, %v370_v6  ;;  %v1039_v49 = vsel %vm385_vm0, %v1036_v22, %v1038_v25  ;;  %v504_v18 = vrot.slane %v489_v0, 2  ;;  %v1312_v19 = vmul.f32 %v2842_v11, %v2739_v58 }
  0xe9   : > { %v431_v45 = vpop.permute.xlu1 %430  ;;  %v402_v4 = vadd.f32 %v393_v47, %v369_v27  ;;  %v1313_v10 = vmul.f32 %v2842_v11, %v2797_v16  ;;  %v1311_v22 = vmul.f32 %v2842_v11, %v2727_v46  ;;  %v1042_v25 = vsel %vm385_vm0, %v1040_v31, %v1041_v36 }
  0xea   : > { %v429_v48 = vpop.permute.xlu0 %428  ;;  %v441_v61 = vadd.f32 %v431_v45, %v401_v13  ;;  %v1287_v34 = vsel %vm385_vm0, %v1284_v7, %v1286_v8  ;;  %v1285_v6 = vsel %vm385_vm0, %v1283_v55, %v1284_v7  ;;  %v1292_v27 = vsel %vm385_vm0, %v1289_v17, %v1291_v9 }
  0xeb   : > { %v440_v2 = vadd.f32 %v429_v48, %v400_v15  ;;  %1011 = vrot.lane.b32.xlu1 %v1004_v53, %s3979_s6  ;;  %v1044_v53 = vsel %vm385_vm0, %v1041_v36, %v1043_v42  ;;  %v507_v15 = vrot.slane %v491_v63, 2  ;;  %v2875_v39 = vstv %s2824_s16  ;;  %s2902_s16 = sld [smem:[#allocation2 + $0x502]] }
  0xec   : > { %1009 = vrot.lane.b32.xlu0 %v1002_v51, %s3979_s6  ;;  %v1288_v51 = vrot.slane %v1274_v54, 1  ;;  %s2871_s6 = sld [smem:[#allocation8 + $0x6]]  ;;  %4008 = vst [vmem:[#allocation15_spill] sm:$0xff] %v2875_v39  ;;  %v2878_v37 = vstv %s2817_s15  ;;  %v2881_v36 = vstv %s2826_s17  ;;  %v506_v44 = vsel %vm498_vm1, %v504_v18, %v505_v12  ;;  %s2894_s15 = sld [smem:[#allocation2 + $0x200]] }
  0xed   : > { %v435_v1 = vpop.permute.xlu1 %434  ;;  %4009 = vst [vmem:[#allocation16_spill] sm:$0xff] %v2881_v36  ;;  %v508_v43 = vsel %vm498_vm1, %v505_v12, %v507_v15  ;;  %v1324_v45 = vrot.slane %v1312_v19, 1  ;;  %v1326_v48 = vrot.slane %v1313_v10, 1  ;;  %v2892_v31 = vstv %s2832_s23  ;;  %s2916_s17 = sld [smem:[#allocation7 + $0x380]]  ;;  %s2918_s23 = sld [smem:[#allocation5 + $0x1]] }
  0xee   : > { %v433_v62 = vpop.permute.xlu0 %432  ;;  %v443_v14 = vadd.f32 %v435_v1, %v403_v41  ;;  %v1290_v38 = vsel %vm385_vm0, %v1288_v51, %v1289_v17  ;;  %v2908_v7 = vstv %s2844_s9  ;;  %v2911_v8 = vstv %s2849_s13  ;;  %s3024_s9 = sld [smem:[#allocation7 + $0x1]] }
  0xef   : > { %v442_v13 = vadd.f32 %v433_v62, %v402_v4  ;;  %1047 = vrot.lane.b32.xlu1 %v1039_v49, %s3981_s8  ;;  %v1323_v49 = vrot.slane %v1311_v22, 1  ;;  %4012 = vst [vmem:[#allocation18_spill] sm:$0xff] %v2908_v7  ;;  %v2914_v55 = vstv %s2851_s11  ;;  %v1315_v4 = vmul.f32 %v2842_v11, %v2755_v5  ;;  %s3066_s13 = sld [smem:[#allocation7 + $0x81]] }
  0xf0   : > { %1045 = vrot.lane.b32.xlu0 %v1037_v3, %s3981_s8  ;;  %s2883_s8 = sld [smem:[#allocation7 + $0x300]]  ;;  %v2905_v3 = vstv %s2834_s25  ;;  %4013 = vst [vmem:[#allocation19_spill] sm:$0xff] %v2914_v55  ;;  %v1316_v17 = vmul.f32 %v2842_v11, %v2806_v35  ;;  %s4014_s25 = smov 127   ;;  %v1327_v9 = vsel %vm385_vm0, %v1324_v45, %v1326_v48  ;;  %v2928_v1 = vstv %s2861_s14 }
  0xf1   : > { %v471_v47 = vpop.permute.xlu1 %470  ;;  %v1314_v62 = vmul.f32 %v2842_v11, %v2736_v57  ;;  %v1325_v12 = vsel %vm385_vm0, %v1323_v49, %v1324_v45  ;;  %v2939_v19 = vstv %s2869_s12  ;;  %v2948_v11 = vstv %s2885_s0  ;;  %s2958_s0 = sld [smem:[#allocation2 + $0x280]]  ;;  %s3068_s11 = sld [smem:[#allocation7 + $0x101]] }
  0xf2   : > { %v469_v50 = vpop.permute.xlu0 %468  ;;  %v481_v41 = vadd.f32 %v471_v47, %v441_v61  ;;  %v2899_v61 = vstv %s2839_s7  ;;  %v2942_v10 = vstv %s2871_s6  ;;  %4017 = vst [vmem:[#allocation22_spill] sm:$0xff] %v2948_v11  ;;  %v1331_v47 = vrot.slane %v1316_v17, 1  ;;  %s2950_s7 = sld [smem:[#allocation2 + $0x701]]  ;;  %s2988_s6 = sld [smem:[#allocation2 + $0x702]] }
  0xf3   : > { %v480_v42 = vadd.f32 %v469_v50, %v440_v2  ;;  %1051 = vrot.lane.b32.xlu1 %v1044_v53, %s4010_s1  ;;  %4011 = vst [vmem:[#allocation17_spill] sm:$0xff] %v2899_v61  ;;  %v1094_v2 = vstv %s2846_s10  ;;  %4016 = vst [vmem:[#allocation21_spill] sm:$0xff] %v2942_v10  ;;  %v1328_v50 = vrot.slane %v1314_v62, 1  ;;  %s3059_s10 = sld [smem:[#allocation2 + $0x400]]  ;;  %s3073_s14 = sld [smem:[#allocation7 + $0x181]] }
  0xf4   : > { %1049 = vrot.lane.b32.xlu0 %v1042_v25, %s4010_s1  ;;  %v514_v54 = vadd.f32 %v2647_v21, %v481_v41  ;;  %v1096_v53 = vmul.f32 %v1094_v2, %v2695_v20  ;;  %v1099_v49 = vmul.f32 %v1094_v2, %v2705_v29  ;;  %s3081_s12 = sld [smem:[#allocation7 + $0x281]] }
  0xf5   : > { %v513_v56 = vadd.f32 %v2654_v24, %v480_v42  ;;  %v475_v63 = vpop.permute.xlu1 %474  ;;  %v1095_v42 = vmul.f32 %v1094_v2, %v2698_v23 }
  0xf6   : > { %v473_v0 = vpop.permute.xlu0 %472  ;;  %v483_v21 = vadd.f32 %v475_v63, %v443_v14  ;;  %v2935_v14 = vstv %s2863_s30  ;;  %v2945_v22 = vstv %s2883_s8  ;;  %v1108_v41 = vrot.slane %v1096_v53, 2  ;;  %s3016_s8 = sld [smem:[#allocation2 + $0x300]]  ;;  %s3079_s30 = sld [smem:[#allocation7 + $0x201]] }
  0xf7   : > { %v482_v24 = vadd.f32 %v473_v0, %v442_v13  ;;  %1295 = vrot.lane.b32.xlu1 %v1287_v34, %s4014_s25  ;;  %4015 = vst [vmem:[#allocation20_spill] sm:$0xff] %v2935_v14  ;;  %v1097_v13 = vmul.f32 %v1094_v2, %v2742_v59  ;;  %v2961_v0 = vstv %s2916_s17  ;;  %v1107_v53 = vrot.slane %v1095_v42, 2  ;;  %s3091_s17 = sld [smem:[#allocation7 + $0x381]] }
  0xf8   : > { %1293 = vrot.lane.b32.xlu0 %v1285_v6, %s4014_s25  ;;  %v516_v51 = vadd.f32 %v508_v43, %v483_v21  ;;  %v1329_v6 = vrot.slane %v1315_v4, 1  ;;  %v600_v43 = vstv %s2894_s15  ;;  %4018 = vst [vmem:[#allocation23_spill] sm:$0xff] %v2961_v0  ;;  %v598_v21 = vstv %s2918_s23  ;;  %s3085_s15 = sld [smem:[#allocation7 + $0x301]]  ;;  %s1999_s23 = sld [smem:[#allocation2 + $0x600]] }
  0xf9   : > { %v544_v15 = vpop.permute.xlu1 %543  ;;  %v515_v45 = vadd.f32 %v506_v44, %v482_v24  ;;  %v1110_v48 = vrot.slane %v1097_v13, 2  ;;  %v602_v24 = vmul.f32 %v600_v43, %v2577_v26 }
  0xfa   : > { %v542_v18 = vpop.permute.xlu0 %541  ;;  %v554_v25 = vadd.f32 %v544_v15, %v514_v54  ;;  %v1134_v54 = vstv %s2902_s16  ;;  %v1332_v44 = vsel %vm385_vm0, %v1329_v6, %v1331_v47  ;;  %v1330_v62 = vsel %vm385_vm0, %v1328_v50, %v1329_v6  ;;  %s3087_s16 = sld [smem:[#allocation5 + $0x2]] }
  0xfb   : > { %v553_v34 = vadd.f32 %v542_v18, %v513_v56  ;;  %1299 = vrot.lane.b32.xlu1 %v1292_v27, %s4014_s25  ;;  %v1100_v27 = vmul.f32 %v1094_v2, %v2745_v60  ;;  %v1136_v13 = vmul.f32 %v1134_v54, %v2695_v20  ;;  %v601_v15 = vmul.f32 %v600_v43, %v2580_v28 }
  0xfc   : > { %1297 = vrot.lane.b32.xlu0 %v1290_v38, %s4014_s25  ;;  %v1098_v38 = vmul.f32 %v1094_v2, %v2708_v30  ;;  %v1137_v2 = vmul.f32 %v1134_v54, %v2742_v59  ;;  %v1113_v18 = vrot.slane %v1099_v49, 2  ;;  %v1135_v47 = vmul.f32 %v1134_v54, %v2698_v23 }
  0xfd   : > { %v548_v56 = vpop.permute.xlu1 %547  ;;  %v603_v6 = vmul.f32 %v600_v43, %v2592_v33  ;;  %v1139_v59 = vmul.f32 %v1134_v54, %v2705_v29  ;;  %v1109_v49 = vsel %vm498_vm1, %v1107_v53, %v1108_v41  ;;  %v2998_v14 = vadd.f32 %v601_v15, %v598_v21 }
  0xfe   : > { %v546_v63 = vpop.permute.xlu0 %545  ;;  %v2966_v4 = vadd.f32 %v548_v56, %v516_v51  ;;  %v1111_v51 = vsel %vm498_vm1, %v1108_v41, %v1110_v48  ;;  %v1382_v48 = vstv %s2950_s7  ;;  %v1150_v11 = vrot.slane %v1137_v2, 2  ;;  %s2002_s7 = sld [smem:[#allocation2 + $0x680]] }
  0xff   : > { %v2968_v17 = vadd.f32 %v546_v63, %v515_v45  ;;  %1335 = vrot.lane.b32.xlu1 %v1327_v9, %s4010_s1  ;;  %v1115_v9 = vrot.slane %v1100_v27, 2  ;;  %v1112_v63 = vrot.slane %v1098_v38, 2  ;;  %v2993_v27 = vadd.f32 %v602_v24, %v598_v21 }
 0x100   : > { %1333 = vrot.lane.b32.xlu0 %v1325_v12, %s4010_s1  ;;  %v604_v12 = vmul.f32 %v600_v43, %v2589_v32  ;;  %v1148_v38 = vrot.slane %v1136_v13, 2  ;;  %v1147_v43 = vrot.slane %v1135_v47, 2  ;;  %v1385_v41 = vmul.f32 %v1382_v48, %v2797_v16 }
 0x101   : > { %v584_v45 = vpop.permute.xlu1 %583  ;;  %v1116_v24 = vsel %vm498_vm1, %v1113_v18, %v1115_v9  ;;  %v3006_v53 = vadd.f32 %v603_v6, %v598_v21  ;;  %v1383_v13 = vmul.f32 %v1382_v48, %v2727_v46  ;;  %v1387_v6 = vmul.f32 %v1382_v48, %v2755_v5 }
 0x102   : > { %v582_v56 = vpop.permute.xlu0 %581  ;;  %v2982_v50 = vadd.f32 %v584_v45, %v554_v25  ;;  %v1140_v25 = vmul.f32 %v1134_v54, %v2745_v60  ;;  %v662_v45 = vstv %s2958_s0  ;;  %v3000_v55 = vadd.f32 %v604_v12, %v598_v21  ;;  %s3462_s0 = sld [smem:[#allocation2 + $0x500]] }
 0x103   : > { %v2984_v42 = vadd.f32 %v582_v56, %v553_v34  ;;  %1339 = vrot.lane.b32.xlu1 %v1332_v44, %s4010_s1  ;;  %v1138_v34 = vmul.f32 %v1134_v54, %v2708_v30  ;;  %v1384_v44 = vmul.f32 %v1382_v48, %v2739_v58  ;;  %v1153_v60 = vrot.slane %v1139_v59, 2 }
 0x104   : > { %1337 = vrot.lane.b32.xlu0 %v1330_v62, %s4010_s1  ;;  %v1114_v62 = vsel %vm498_vm1, %v1112_v63, %v1113_v18  ;;  %v1151_v54 = vsel %vm498_vm1, %v1148_v38, %v1150_v11  ;;  %v664_v2 = vmul.f32 %v662_v45, %v2577_v26  ;;  %v665_v15 = vmul.f32 %v662_v45, %v2605_v40 }
 0x105   : > { %4019 = vst [vmem:[#allocation24_spill] sm:$0xff] %v2984_v42  ;;  %v588_v56 = vpop.permute.xlu1 %587  ;;  %v1149_v47 = vsel %vm498_vm1, %v1147_v43, %v1148_v38  ;;  %v1155_v9 = vrot.slane %v1140_v25, 2  ;;  %v1152_v18 = vrot.slane %v1138_v34, 2  ;;  %v663_v21 = vmul.f32 %v662_v45, %v2580_v28 }
 0x106   : > { %v586_v10 = vpop.permute.xlu0 %585  ;;  %v1396_v11 = vrot.slane %v1384_v44, 2  ;;  %v1398_v12 = vrot.slane %v1385_v41, 2  ;;  %v1388_v59 = vmul.f32 %v1382_v48, %v2806_v35  ;;  %v1386_v42 = vmul.f32 %v1382_v48, %v2736_v57 }
 0x107   : > { %1119 = vrot.lane.b32.xlu1 %v1111_v51, %s4014_s25  ;;  %v668_v38 = vmul.f32 %v662_v45, %v2621_v52  ;;  %v1422_v43 = vstv %s2988_s6  ;;  %v1395_v25 = vrot.slane %v1383_v13, 2  ;;  %v676_v34 = vrot.slane %v664_v2, 1  ;;  %s3477_s6 = sld [smem:[#allocation2 + $0x700]] }
 0x108   : > { %1117 = vrot.lane.b32.xlu0 %v1109_v49, %s4014_s25  ;;  %v667_v49 = vmul.f32 %v662_v45, %v2589_v32  ;;  %v678_v7 = vrot.slane %v665_v15, 1  ;;  %v666_v44 = vmul.f32 %v662_v45, %v2592_v33  ;;  %v3029_v41 = vadd.f32 %v588_v56, %v2966_v4 }
 0x109   : > { %v622_v51 = vpop.permute.xlu1 %621  ;;  %v3032_v61 = vadd.f32 %v586_v10, %v2968_v17  ;;  %v1156_v48 = vsel %vm498_vm1, %v1153_v60, %v1155_v9  ;;  %v675_v36 = vrot.slane %v663_v21, 1  ;;  %v1401_v13 = vrot.slane %v1387_v6, 2 }
 0x10a   : > { %v620_v63 = vpop.permute.xlu0 %619  ;;  %v3038_v2 = vmul.f32 %v1422_v43, %v2739_v58  ;;  %v1425_v33 = vmul.f32 %v1422_v43, %v2797_v16  ;;  %v1403_v4 = vrot.slane %v1388_v59, 2  ;;  %v1400_v45 = vrot.slane %v1386_v42, 2 }
 0x10b   : > { %1123 = vrot.lane.b32.xlu1 %v1116_v24, %s4014_s25  ;;  %v1154_v24 = vsel %vm498_vm1, %v1152_v18, %v1153_v60  ;;  %v681_v10 = vrot.slane %v667_v49, 1  ;;  %v683_v17 = vrot.slane %v668_v38, 1  ;;  %v1399_v56 = vsel %vm498_vm1, %v1396_v11, %v1398_v12 }
 0x10c   : > { %1121 = vrot.lane.b32.xlu0 %v1114_v62, %s4014_s25  ;;  %v1397_v62 = vsel %vm498_vm1, %v1395_v25, %v1396_v11  ;;  %v679_v15 = vsel %vm385_vm0, %v676_v34, %v678_v7  ;;  %v680_v60 = vrot.slane %v666_v44, 1  ;;  %v677_v58 = vsel %vm385_vm0, %v675_v36, %v676_v34 }
 0x10d   : > { %v626_v39 = vpop.permute.xlu1 %625  ;;  %v1423_v16 = vmul.f32 %v1422_v43, %v2727_v46  ;;  %v1427_v42 = vmul.f32 %v1422_v43, %v2755_v5  ;;  %v774_v9 = vstv %s3016_s8  ;;  %v1438_v12 = vrot.slane %v1425_v33, 2  ;;  %s3520_s8 = sld [smem:[#allocation7 + $0x82]] }
 0x10e   : > { %v624_v0 = vpop.permute.xlu0 %623  ;;  %v1428_v11 = vmul.f32 %v1422_v43, %v2806_v35  ;;  %v1426_v7 = vmul.f32 %v1422_v43, %v2736_v57  ;;  %v1404_v6 = vsel %vm498_vm1, %v1401_v13, %v1403_v4  ;;  %v684_v36 = vsel %vm385_vm0, %v681_v10, %v683_v17 }
 0x10f   : > { %1159 = vrot.lane.b32.xlu1 %v1151_v54, %s4010_s1  ;;  %v1436_v54 = vrot.slane %v3038_v2, 2  ;;  %v3057_v59 = vstv %s3024_s9  ;;  %v682_v46 = vsel %vm385_vm0, %v680_v60, %v681_v10  ;;  %v776_v5 = vmul.f32 %v774_v9, %v2577_v26  ;;  %s3522_s9 = sld [smem:[#allocation7 + $0x102]] }
 0x110   : > { %1157 = vrot.lane.b32.xlu0 %v1149_v47, %s4010_s1  ;;  %v1402_v47 = vsel %vm498_vm1, %v1400_v45, %v1401_v13  ;;  %v777_v35 = vmul.f32 %v774_v9, %v2605_v40  ;;  %v775_v57 = vmul.f32 %v774_v9, %v2580_v28  ;;  %v632_v49 = vadd.f32 %v622_v51, %v2993_v27 }
 0x111   : > { %v648_v18 = vpop.permute.xlu1 %647  ;;  %v631_v38 = vadd.f32 %v620_v63, %v2998_v14  ;;  %v1435_v43 = vrot.slane %v1423_v16, 2  ;;  %v1441_v25 = vrot.slane %v1427_v42, 2  ;;  %v1439_v40 = vsel %vm498_vm1, %v1436_v54, %v1438_v12 }
 0x112   : > { %v646_v21 = vpop.permute.xlu0 %645  ;;  %v1443_v44 = vrot.slane %v1428_v11, 2  ;;  %v1440_v28 = vrot.slane %v1426_v7, 2  ;;  %v634_v14 = vadd.f32 %v626_v39, %v3000_v55  ;;  %v633_v27 = vadd.f32 %v624_v0, %v3006_v53 }
 0x113   : > { %1163 = vrot.lane.b32.xlu1 %v1156_v48, %s4010_s1  ;;  %v3077_v48 = vmul.f32 %v774_v9, %v2589_v32  ;;  %v658_v51 = vadd.f32 %v648_v18, %v632_v49  ;;  %v657_v63 = vadd.f32 %v646_v21, %v631_v38  ;;  %v790_v32 = vrot.slane %v777_v35, 2 }
 0x114   : > { %1161 = vrot.lane.b32.xlu0 %v1154_v24, %s4010_s1  ;;  %v788_v24 = vrot.slane %v776_v5, 2  ;;  %v787_v13 = vrot.slane %v775_v57, 2  ;;  %v780_v2 = vmul.f32 %v774_v9, %v2621_v52  ;;  %v1437_v45 = vsel %vm498_vm1, %v1435_v43, %v1436_v54  ;;  %v2169_v52 = vld [vmem:[%s2486_s26 + $0x78] sm:$0xff] }
 0x115   : > { %v652_v34 = vpop.permute.xlu1 %651  ;;  %v690_v0 = vadd.f32 %v679_v15, %v658_v51  ;;  %v689_v53 = vadd.f32 %v677_v58, %v657_v63  ;;  %v1444_v10 = vsel %vm498_vm1, %v1441_v25, %v1443_v44  ;;  %v1442_v17 = vsel %vm498_vm1, %v1440_v28, %v1441_v25 }
 0x116   : > { %v650_v26 = vpop.permute.xlu0 %649  ;;  %v660_v39 = vadd.f32 %v652_v34, %v634_v14  ;;  %v888_v15 = vstv %s3059_s10  ;;  %v3102_v58 = vsel %vm498_vm1, %v788_v24, %v790_v32  ;;  %v3105_v42 = vsel %vm498_vm1, %v787_v13, %v788_v24  ;;  %s3537_s10 = sld [smem:[#allocation7 + $0x182]] }
 0x117   : > { %1407 = vrot.lane.b32.xlu1 %v1399_v56, %s4014_s25  ;;  %v659_v55 = vadd.f32 %v650_v26, %v633_v27  ;;  %v778_v56 = vmul.f32 %v2169_v52, %v774_v9  ;;  %v3108_v18 = vstv %s3066_s13  ;;  %v3111_v21 = vstv %s3068_s11  ;;  %v4026_v52 = vld [vmem:[#allocation17_spill] sm:$0xff]  ;;  %s3539_s13 = sld [smem:[#allocation7 + $0x202]] }
 0x118   : > { %1405 = vrot.lane.b32.xlu0 %v1397_v62, %s4014_s25  ;;  %v793_v62 = vrot.slane %v3077_v48, 2  ;;  %v692_v9 = vadd.f32 %v684_v36, %v660_v39  ;;  %v795_v12 = vrot.slane %v780_v2, 2  ;;  %v3115_v11 = vstv %s3073_s14  ;;  %v4021_v2 = vld [vmem:[#allocation23_spill] sm:$0xff]  ;;  %s3548_s11 = sld [smem:[#allocation7 + $0x282]] }
 0x119   : > { %v720_v33 = vpop.permute.xlu1 %719  ;;  %v691_v54 = vadd.f32 %v682_v46, %v659_v55  ;;  %v792_v5 = vrot.slane %v778_v56, 2  ;;  %v3118_v35 = vstv %s3079_s30  ;;  %v890_v57 = vmul.f32 %v888_v15, %v2695_v20  ;;  %s3550_s14 = sld [smem:[#allocation7 + $0x302]] }
 0x11a   : > { %v718_v4 = vpop.permute.xlu0 %717  ;;  %v730_v60 = vadd.f32 %v720_v33, %v690_v0  ;;  %v889_v49 = vmul.f32 %v888_v15, %v2698_v23  ;;  %v3123_v25 = vstv %s3081_s12  ;;  %v3128_v36 = vstv %s3085_s15  ;;  %s3562_s30 = sld [smem:[#allocation7 + $0x382]]  ;;  %s3570_s12 = sld [smem:[#allocation7 + $0x3]] }
 0x11b   : > { %v729_v16 = vadd.f32 %v718_v4, %v689_v53  ;;  %1411 = vrot.lane.b32.xlu1 %v1404_v6, %s4014_s25  ;;  %v3131_v46 = vstv %s3091_s17  ;;  %v892_v34 = vmul.f32 %v888_v15, %v2705_v29  ;;  %v891_v26 = vmul.f32 %v888_v15, %v2708_v30  ;;  %v4024_v53 = vld [vmem:[#allocation15_spill] sm:$0xff]  ;;  %v4025_v4 = vld [vmem:[#allocation16_spill] sm:$0xff]  ;;  %s3581_s15 = sld [smem:[#allocation7 + $0x83]] }
 0x11c   : > { %1409 = vrot.lane.b32.xlu0 %v1402_v47, %s4014_s25  ;;  %v886_v47 = vstv %s3087_s16  ;;  %v1466_v20 = vmul.f32 %v2878_v37, %v2982_v50  ;;  %v1513_v23 = vmul.f32 %v2892_v31, %v2982_v50  ;;  %v1560_v44 = vmul.f32 %v2905_v3, %v2982_v50  ;;  %s1998_s25 = sld [smem:[#allocation5 + $0x3]] }
 0x11d   : > { %v724_v7 = vpop.permute.xlu1 %723  ;;  %v796_v29 = vsel %vm498_vm1, %v793_v62, %v795_v12  ;;  %v794_v30 = vsel %vm498_vm1, %v792_v5, %v793_v62  ;;  %v3146_v14 = vadd.f32 %v890_v57, %v886_v47  ;;  %v3148_v27 = vadd.f32 %v889_v49, %v886_v47  ;;  %v4030_v5 = vld [vmem:[#allocation20_spill] sm:$0xff]  ;;  %s3583_s16 = sld [smem:[#allocation7 + $0x103]] }
 0x11e   : > { %v722_v6 = vpop.permute.xlu0 %721  ;;  %v732_v38 = vadd.f32 %v724_v7, %v692_v9  ;;  %v1654_v51 = vmul.f32 %v2928_v1, %v2982_v50  ;;  %v1701_v63 = vmul.f32 %v2939_v19, %v2982_v50  ;;  %v1748_v13 = vmul.f32 %v2945_v22, %v2982_v50  ;;  %v4029_v7 = vld [vmem:[#allocation19_spill] sm:$0xff]  ;;  %s3634_s17 = sld [smem:[#allocation7 + $0x183]] }
 0x11f   : > { %v731_v43 = vadd.f32 %v722_v6, %v691_v54  ;;  %1447 = vrot.lane.b32.xlu1 %v1439_v40, %s4010_s1  ;;  %v1607_v40 = vmul.f32 %v2911_v8, %v2982_v50  ;;  %4020 = vst [vmem:[#allocation25_spill] sm:$0xff] %v3148_v27  ;;  %v1795_v39 = vmul.f32 %v4021_v2, %v2982_v50  ;;  %v4028_v50 = vld [vmem:[#allocation24_spill] sm:$0xff] }
 0x120   : > { %1445 = vrot.lane.b32.xlu0 %v1437_v45, %s4010_s1  ;;  %v3159_v55 = vadd.f32 %v892_v34, %v886_v47  ;;  %v3161_v0 = vadd.f32 %v891_v26, %v886_v47  ;;  %v3164_v33 = vadd.f32 %v1466_v20, %v4024_v53  ;;  %v3167_v45 = vadd.f32 %v1513_v23, %v4025_v4  ;;  %v4031_v47 = vld [vmem:[#allocation21_spill] sm:$0xff]  ;;  %v4032_v26 = vld [vmem:[#allocation22_spill] sm:$0xff] }
 0x121   : > { %v760_v28 = vpop.permute.xlu1 %759  ;;  %v3170_v56 = vadd.f32 %v1560_v44, %v4026_v52  ;;  %v1512_v62 = vmul.f32 %v2892_v31, %v4028_v50  ;;  %v1559_v15 = vmul.f32 %v2905_v3, %v4028_v50  ;;  %v1606_v9 = vmul.f32 %v2911_v8, %v4028_v50 }
 0x122   : > { %v758_v48 = vpop.permute.xlu0 %757  ;;  %v770_v24 = vadd.f32 %v760_v28, %v730_v60  ;;  %4022 = vst [vmem:[#allocation23_spill] sm:$0xff] %v3159_v55  ;;  %4023 = vst [vmem:[#allocation26_spill] sm:$0xff] %v3161_v0  ;;  %v4027_v60 = vld [vmem:[#allocation18_spill] sm:$0xff]  ;;  %v3185_v6 = vadd.f32 %v1654_v51, %v4029_v7  ;;  %v3188_v57 = vadd.f32 %v1701_v63, %v4030_v5 }
 0x123   : > { %v769_v32 = vadd.f32 %v758_v48, %v729_v16  ;;  %1451 = vrot.lane.b32.xlu1 %v1444_v10, %s4010_s1  ;;  %v3173_v16 = vadd.f32 %v1607_v40, %v4027_v60  ;;  %v1465_v10 = vmul.f32 %v2878_v37, %v4028_v50  ;;  %v3191_v34 = vadd.f32 %v1748_v13, %v4031_v47 }
 0x124   : > { %1449 = vrot.lane.b32.xlu0 %v1442_v17, %s4010_s1  ;;  %v3194_v20 = vadd.f32 %v1795_v39, %v4032_v26  ;;  %v1653_v23 = vmul.f32 %v2928_v1, %v4028_v50  ;;  %v1700_v44 = vmul.f32 %v2939_v19, %v4028_v50  ;;  %v1747_v40 = vmul.f32 %v2945_v22, %v4028_v50  ;;  %s1992_s1 = sld [smem:[#allocation2 + $0x480]] }
 0x125   : > { %v764_v54 = vpop.permute.xlu1 %763  ;;  %v1794_v28 = vmul.f32 %v4021_v2, %v4028_v50  ;;  %v3207_v48 = vadd.f32 %v1465_v10, %v4024_v53  ;;  %v3210_v51 = vadd.f32 %v1512_v62, %v4025_v4  ;;  %v3213_v63 = vadd.f32 %v1559_v15, %v4026_v52 }
 0x126   : > { %v762_v12 = vpop.permute.xlu0 %761  ;;  %v772_v17 = vadd.f32 %v764_v54, %v732_v38  ;;  %v802_v38 = vadd.f32 %v3102_v58, %v770_v24  ;;  %v3216_v13 = vadd.f32 %v1606_v9, %v4027_v60  ;;  %v1468_v50 = vmul.f32 %v2878_v37, %v3029_v41 }
 0x127   : > { %v771_v49 = vadd.f32 %v762_v12, %v731_v43  ;;  %v801_v43 = vadd.f32 %v3105_v42, %v769_v32  ;;  %v1515_v58 = vmul.f32 %v2892_v31, %v3029_v41  ;;  %v3223_v32 = vadd.f32 %v1653_v23, %v4029_v7 }
 0x128   : > { %v3226_v10 = vadd.f32 %v1700_v44, %v4030_v5  ;;  %v1562_v62 = vmul.f32 %v2905_v3, %v3029_v41  ;;  %v1609_v15 = vmul.f32 %v2911_v8, %v3029_v41  ;;  %v1656_v9 = vmul.f32 %v2928_v1, %v3029_v41 }
 0x129   : > { %v832_v39 = vpop.permute.xlu1 %831  ;;  %v1703_v12 = vmul.f32 %v2939_v19, %v3029_v41  ;;  %v3237_v23 = vadd.f32 %v1747_v40, %v4031_v47  ;;  %v3240_v44 = vadd.f32 %v1794_v28, %v4032_v26  ;;  %v3247_v27 = vadd.f32 %v1468_v50, %v4024_v53 }
 0x12a   : > { %v830_v54 = vpop.permute.xlu0 %829  ;;  %v842_v42 = vadd.f32 %v832_v39, %v802_v38  ;;  %v804_v38 = vadd.f32 %v796_v29, %v772_v17  ;;  %v1750_v39 = vmul.f32 %v2945_v22, %v3029_v41  ;;  %v3250_v29 = vadd.f32 %v1515_v58, %v4025_v4 }
 0x12b   : > { %v841_v24 = vadd.f32 %v830_v54, %v801_v43  ;;  %v803_v43 = vadd.f32 %v794_v30, %v771_v49  ;;  %v1797_v54 = vmul.f32 %v4021_v2, %v3029_v41  ;;  %v1467_v49 = vmul.f32 %v2878_v37, %v3032_v61 }
 0x12c   : > { %v1514_v40 = vmul.f32 %v2892_v31, %v3032_v61  ;;  %v1561_v28 = vmul.f32 %v2905_v3, %v3032_v61  ;;  %v1608_v41 = vmul.f32 %v2911_v8, %v3032_v61  ;;  %v3261_v50 = vadd.f32 %v1562_v62, %v4026_v52 }
 0x12d   : > { %v836_v0 = vpop.permute.xlu1 %835  ;;  %v3264_v58 = vadd.f32 %v1609_v15, %v4027_v60  ;;  %v3270_v37 = vadd.f32 %v1703_v12, %v4030_v5  ;;  %v3273_v31 = vadd.f32 %v1750_v39, %v4031_v47  ;;  %v3276_v3 = vadd.f32 %v1797_v54, %v4032_v26 }
 0x12e   : > { %v834_v55 = vpop.permute.xlu0 %833  ;;  %v844_v30 = vadd.f32 %v836_v0, %v804_v38  ;;  %v1655_v8 = vmul.f32 %v2928_v1, %v3032_v61  ;;  %v1702_v0 = vmul.f32 %v2939_v19, %v3032_v61  ;;  %v1796_v12 = vmul.f32 %v4021_v2, %v3032_v61 }
 0x12f   : > { %v843_v17 = vadd.f32 %v834_v55, %v803_v43  ;;  %v3267_v55 = vadd.f32 %v1656_v9, %v4029_v7  ;;  %4033 = vst [vmem:[#allocation15_spill] sm:$0xff] %v3276_v3  ;;  %v1749_v9 = vmul.f32 %v2945_v22, %v3032_v61  ;;  %v3287_v39 = vadd.f32 %v1467_v49, %v4024_v53 }
 0x130   : > { %v3290_v54 = vadd.f32 %v1514_v40, %v4025_v4  ;;  %v3293_v1 = vadd.f32 %v1561_v28, %v4026_v52  ;;  %v3296_v19 = vadd.f32 %v1608_v41, %v4027_v60 }
 0x131   : > { %v872_v62 = vpop.permute.xlu1 %871 }
 0x132   : > { %v870_v15 = vpop.permute.xlu0 %869  ;;  %v882_v38 = vadd.f32 %v872_v62, %v842_v42 }
 0x133   : > { %v881_v43 = vadd.f32 %v870_v15, %v841_v24 }
 0x134   : > { %v1476_v3 = vmul.f32 %v3057_v59, %v882_v38  ;;  %v1523_v22 = vmul.f32 %v3108_v18, %v882_v38  ;;  %v1570_v61 = vmul.f32 %v3111_v21, %v882_v38  ;;  %v1617_v2 = vmul.f32 %v3115_v11, %v882_v38 }
 0x135   : > { %v1664_v53 = vmul.f32 %v3118_v35, %v882_v38  ;;  %v1711_v42 = vmul.f32 %v3123_v25, %v882_v38  ;;  %v1758_v4 = vmul.f32 %v3128_v36, %v882_v38  ;;  %v1805_v52 = vmul.f32 %v3131_v46, %v882_v38  ;;  %v876_v24 = vpop.permute.xlu1 %875 }
 0x136   : > { %v874_v49 = vpop.permute.xlu0 %873  ;;  %v3307_v60 = vadd.f32 %v1476_v3, %v3164_v33  ;;  %v3310_v40 = vadd.f32 %v1523_v22, %v3167_v45  ;;  %v3313_v28 = vadd.f32 %v1570_v61, %v3170_v56  ;;  %v3316_v41 = vadd.f32 %v1617_v2, %v3173_v16 }
 0x137   : > { %v3319_v62 = vadd.f32 %v1664_v53, %v3185_v6  ;;  %v3322_v15 = vadd.f32 %v1711_v42, %v3188_v57  ;;  %v3325_v38 = vadd.f32 %v1758_v4, %v3191_v34  ;;  %v3328_v33 = vadd.f32 %v1805_v52, %v3194_v20 }
 0x138   : > { %4034 = vst [vmem:[#allocation16_spill] sm:$0xff] %v3307_v60  ;;  %4035 = vst [vmem:[#allocation17_spill] sm:$0xff] %v3310_v40  ;;  %v1475_v45 = vmul.f32 %v3057_v59, %v881_v43  ;;  %v1522_v56 = vmul.f32 %v3108_v18, %v881_v43  ;;  %v1569_v3 = vmul.f32 %v3111_v21, %v881_v43 }
 0x139   : > { %4036 = vst [vmem:[#allocation18_spill] sm:$0xff] %v3313_v28  ;;  %4037 = vst [vmem:[#allocation24_spill] sm:$0xff] %v3316_v41  ;;  %v1616_v16 = vmul.f32 %v3115_v11, %v881_v43  ;;  %v1663_v6 = vmul.f32 %v3118_v35, %v881_v43  ;;  %v1710_v22 = vmul.f32 %v3123_v25, %v881_v43  ;;  %v910_v61 = vpop.permute.xlu1 %909 }
 0x13a   : > { %4038 = vst [vmem:[#allocation19_spill] sm:$0xff] %v3319_v62  ;;  %4039 = vst [vmem:[#allocation20_spill] sm:$0xff] %v3322_v15  ;;  %v1757_v57 = vmul.f32 %v3128_v36, %v881_v43  ;;  %v1804_v34 = vmul.f32 %v3131_v46, %v881_v43  ;;  %v908_v2 = vpop.permute.xlu0 %907  ;;  %v3339_v20 = vadd.f32 %v1475_v45, %v3207_v48 }
 0x13b   : > { %4040 = vst [vmem:[#allocation21_spill] sm:$0xff] %v3325_v38  ;;  %4041 = vst [vmem:[#allocation22_spill] sm:$0xff] %v3328_v33  ;;  %v3342_v53 = vadd.f32 %v1522_v56, %v3210_v51  ;;  %v3345_v42 = vadd.f32 %v1569_v3, %v3213_v63  ;;  %v3348_v4 = vadd.f32 %v1616_v16, %v3216_v13 }
 0x13c   : > { %4042 = vst [vmem:[#allocation27_spill] sm:$0xff] %v3339_v20  ;;  %v3351_v52 = vadd.f32 %v1663_v6, %v3223_v32  ;;  %v3354_v33 = vadd.f32 %v1710_v22, %v3226_v10  ;;  %v3357_v43 = vadd.f32 %v1757_v57, %v3237_v23  ;;  %v3360_v48 = vadd.f32 %v1804_v34, %v3240_v44  ;;  %v4050_v10 = vld [vmem:[#allocation25_spill] sm:$0xff]  ;;  %v2181_v20 = vld [vmem:[%s2486_s26 + $0xb8] sm:$0x3] }
 0x13d   : > { %4043 = vst [vmem:[#allocation28_spill] sm:$0xff] %v3342_v53  ;;  %4044 = vst [vmem:[#allocation29_spill] sm:$0xff] %v3345_v42  ;;  %v1659_v51 = vadd.f32 %v1655_v8, %v4029_v7  ;;  %v1706_v63 = vadd.f32 %v1702_v0, %v4030_v5  ;;  %v884_v45 = vadd.f32 %v876_v24, %v844_v30  ;;  %v914_v6 = vpop.permute.xlu1 %913 }
 0x13e   : > { %4045 = vst [vmem:[#allocation30_spill] sm:$0xff] %v3348_v4  ;;  %4046 = vst [vmem:[#allocation31_spill] sm:$0xff] %v3351_v52  ;;  %v883_v56 = vadd.f32 %v874_v49, %v843_v17  ;;  %v1753_v13 = vadd.f32 %v1749_v9, %v4031_v47  ;;  %v1800_v32 = vadd.f32 %v1796_v12, %v4032_v26  ;;  %v912_v23 = vpop.permute.xlu0 %911 }
 0x13f   : > { %4047 = vst [vmem:[#allocation32_spill] sm:$0xff] %v3354_v33  ;;  %4048 = vst [vmem:[#allocation33_spill] sm:$0xff] %v3357_v43  ;;  %v920_v3 = vadd.f32 %v910_v61, %v3146_v14  ;;  %v919_v16 = vadd.f32 %v908_v2, %v4050_v10  ;;  %v1478_v22 = vmul.f32 %v3057_v59, %v884_v45  ;;  %v2180_v43 = vld [vmem:[%s2486_s26 + $0x58] sm:$0x3] }
 0x140   : > { %4049 = vst [vmem:[#allocation34_spill] sm:$0xff] %v3360_v48  ;;  %v1525_v44 = vmul.f32 %v3108_v18, %v884_v45  ;;  %v1572_v7 = vmul.f32 %v3111_v21, %v884_v45  ;;  %v1619_v5 = vmul.f32 %v3115_v11, %v884_v45  ;;  %v1666_v30 = vmul.f32 %v3118_v35, %v884_v45 }
 0x141   : > { %v1713_v47 = vmul.f32 %v3123_v25, %v884_v45  ;;  %v1760_v26 = vmul.f32 %v3128_v36, %v884_v45  ;;  %v1807_v14 = vmul.f32 %v3131_v46, %v884_v45  ;;  %v3377_v17 = vadd.f32 %v1478_v22, %v3247_v27  ;;  %v4058_v27 = vld [vmem:[#allocation15_spill] sm:$0xff] }
 0x142   : > { %v3380_v8 = vadd.f32 %v1525_v44, %v3250_v29  ;;  %v3383_v0 = vadd.f32 %v1572_v7, %v3261_v50  ;;  %v3386_v9 = vadd.f32 %v1619_v5, %v3264_v58  ;;  %v3389_v12 = vadd.f32 %v1666_v30, %v3267_v55  ;;  %v936_v29 = vpop.permute.xlu1 %935  ;;  %v934_v34 = vpop.permute.xlu0 %933 }
 0x143   : > { %4051 = vst [vmem:[#allocation25_spill] sm:$0xff] %v3377_v17  ;;  %v3392_v24 = vadd.f32 %v1713_v47, %v3270_v37  ;;  %v3395_v49 = vadd.f32 %v1760_v26, %v3273_v31  ;;  %v3398_v57 = vadd.f32 %v1807_v14, %v4058_v27  ;;  %v1477_v50 = vmul.f32 %v3057_v59, %v883_v56 }
 0x144   : > { %4052 = vst [vmem:[#allocation35_spill] sm:$0xff] %v3380_v8  ;;  %4053 = vst [vmem:[#allocation36_spill] sm:$0xff] %v3383_v0  ;;  %v1524_v61 = vmul.f32 %v3108_v18, %v883_v56  ;;  %v1571_v58 = vmul.f32 %v3111_v21, %v883_v56  ;;  %v1618_v55 = vmul.f32 %v3115_v11, %v883_v56  ;;  %v950_v27 = vstv %s1992_s1  ;;  %s3636_s1 = sld [smem:[#allocation7 + $0x203]] }
 0x145   : > { %4054 = vst [vmem:[#allocation37_spill] sm:$0xff] %v3386_v9  ;;  %4055 = vst [vmem:[#allocation38_spill] sm:$0xff] %v3389_v12  ;;  %v1665_v2 = vmul.f32 %v3118_v35, %v883_v56  ;;  %v1712_v37 = vmul.f32 %v3123_v25, %v883_v56  ;;  %v1759_v31 = vmul.f32 %v3128_v36, %v883_v56  ;;  %v2179_v9 = vld [vmem:[%s2486_s26 + $0x90] sm:$0xff] }
 0x146   : > { %4056 = vst [vmem:[#allocation39_spill] sm:$0xff] %v3392_v24  ;;  %4057 = vst [vmem:[#allocation40_spill] sm:$0xff] %v3395_v49  ;;  %v1806_v45 = vmul.f32 %v3131_v46, %v883_v56  ;;  %v3409_v10 = vadd.f32 %v1477_v50, %v3287_v39  ;;  %v3412_v22 = vadd.f32 %v1524_v61, %v3290_v54  ;;  %v940_v36 = vpop.permute.xlu1 %939  ;;  %v938_v46 = vpop.permute.xlu0 %937  ;;  %v4068_v39 = vld [vmem:[#allocation23_spill] sm:$0xff]  ;;  %v4069_v54 = vld [vmem:[#allocation26_spill] sm:$0xff] }
 0x147   : > { %4059 = vst [vmem:[#allocation15_spill] sm:$0xff] %v3398_v57  ;;  %v3415_v59 = vadd.f32 %v1571_v58, %v3293_v1  ;;  %v3418_v18 = vadd.f32 %v1618_v55, %v3296_v19  ;;  %v3420_v21 = vadd.f32 %v1665_v2, %v1659_v51  ;;  %v3422_v11 = vadd.f32 %v1712_v37, %v1706_v63  ;;  %v2171_v61 = vld [vmem:[%s2486_s26 + $0x38] sm:$0xff]  ;;  %v2172_v37 = vld [vmem:[%s2486_s26 + $0x48] sm:$0xff] }
 0x148   : > { %4060 = vst [vmem:[#allocation41_spill] sm:$0xff] %v3409_v10  ;;  %4061 = vst [vmem:[#allocation42_spill] sm:$0xff] %v3412_v22  ;;  %v3424_v35 = vadd.f32 %v1759_v31, %v1753_v13  ;;  %v3426_v25 = vadd.f32 %v1806_v45, %v1800_v32  ;;  %v922_v56 = vadd.f32 %v914_v6, %v4068_v39  ;;  %v3474_v45 = vld [vmem:[%s2486_s26 + $0xa8] sm:$0xff]  ;;  %v2174_v39 = vld [vmem:[%s2486_s26 + $0x50] sm:$0xff] }
 0x149   : > { %4062 = vst [vmem:[#allocation43_spill] sm:$0xff] %v3415_v59  ;;  %4063 = vst [vmem:[#allocation44_spill] sm:$0xff] %v3418_v18  ;;  %v921_v44 = vadd.f32 %v912_v23, %v4069_v54  ;;  %v3430_v7 = vadd.f32 %v936_v29, %v920_v3  ;;  %v3432_v1 = vadd.f32 %v934_v34, %v919_v16  ;;  %v1176_v29 = vstv %s1999_s23  ;;  %v2170_v34 = vld [vmem:[%s2486_s26 + $0x30] sm:$0xff]  ;;  %v2177_v59 = vld [vmem:[%s2486_s26 + $0x98] sm:$0xff]  ;;  %s3706_s23 = sld [smem:[#allocation7 + $0x283]] }
 0x14a   : > { %4064 = vst [vmem:[#allocation45_spill] sm:$0xff] %v3420_v21  ;;  %4065 = vst [vmem:[#allocation46_spill] sm:$0xff] %v3422_v11  ;;  %v3434_v19 = vadd.f32 %v940_v36, %v922_v56  ;;  %v3438_v63 = vpop.permute.xlu1 %1195  ;;  %v3440_v13 = vpop.permute.xlu0 %1005  ;;  %v951_v50 = vmul.f32 %v2170_v34, %v950_v27  ;;  %v3466_v58 = vmul.f32 %v2171_v61, %v950_v27  ;;  %v2175_v54 = vld [vmem:[%s2486_s26 + $0xb0] sm:$0xff]  ;;  %v1238_v11 = vstv %s2002_s7  ;;  %v2178_v10 = vld [vmem:[%s2486_s26 + $0xa0] sm:$0x3]  ;;  %s3714_s7 = sld [smem:[#allocation7 + $0x383]] }
 0x14b   : > { %4066 = vst [vmem:[#allocation47_spill] sm:$0xff] %v3424_v35  ;;  %4067 = vst [vmem:[#allocation48_spill] sm:$0xff] %v3426_v25  ;;  %v3436_v51 = vadd.f32 %v938_v46, %v921_v44  ;;  %v1177_v31 = vmul.f32 %v2172_v37, %v1176_v29  ;;  %v1179_v36 = vmul.f32 %v3474_v45, %v1176_v29  ;;  %v1174_v46 = vstv %s1998_s25  ;;  %v2176_v25 = vld [vmem:[%s2486_s26 + $0x40] sm:$0x3]  ;;  %s3515_s26 = sld [smem:[#allocation7 + $0x2]]  ;;  %s3712_s25 = sld [smem:[#allocation7 + $0x303]] }
 0x14c   : > { %v1178_v56 = vmul.f32 %v2174_v39, %v1176_v29  ;;  %v1180_v44 = vmul.f32 %v2175_v54, %v1176_v29  ;;  %v953_v35 = vmul.f32 %v2176_v25, %v950_v27  ;;  %v963_v21 = vrot.slane %v951_v50, 1 }
 0x14d   : > { %v964_v18 = vrot.slane %v3466_v58, 1  ;;  %v3484_v22 = vmul.f32 %v2177_v59, %v950_v27  ;;  %v956_v57 = vmul.f32 %v2178_v10, %v950_v27  ;;  %v3491_v12 = vadd.f32 %v1177_v31, %v1174_v46 }
 0x14e   : > { %v3442_v32 = vpop.permute.xlu1 %1199  ;;  %v3444_v5 = vpop.permute.xlu0 %1197  ;;  %v3493_v29 = vadd.f32 %v1179_v36, %v1174_v46  ;;  %v954_v0 = vmul.f32 %v2179_v9, %v950_v27  ;;  %v1240_v50 = vmul.f32 %v2174_v39, %v1238_v11  ;;  %v1239_v8 = vmul.f32 %v2172_v37, %v1238_v11 }
 0x14f   : > { %v1062_v58 = vstv %s3462_s0  ;;  %v1182_v17 = vadd.f32 %v1178_v56, %v1174_v46  ;;  %v3497_v48 = vadd.f32 %v1180_v44, %v1174_v46  ;;  %v1241_v33 = vmul.f32 %v2180_v43, %v1238_v11  ;;  %s272_s0 = sand.u32 1, %s2308_s19  }
 0x150   : > { %v1243_v52 = vmul.f32 %v2175_v54, %v1238_v11  ;;  %v3501_v4 = vsel %vm385_vm0, %v963_v21, %v964_v18  ;;  %v966_v31 = vrot.slane %v953_v35, 1  ;;  %v969_v36 = vrot.slane %v3484_v22, 1 }
 0x151   : > { %v971_v42 = vrot.slane %v956_v57, 1  ;;  %v1244_v38 = vmul.f32 %v2181_v20, %v1238_v11  ;;  %v1242_v56 = vmul.f32 %v3474_v45, %v1238_v11  ;;  %v1064_v46 = vmul.f32 %v2171_v61, %v1062_v58 }
 0x152   : > { %v3446_v6 = vpop.permute.xlu1 %1221  ;;  %v3448_v23 = vpop.permute.xlu0 %1201  ;;  %v1350_v44 = vstv %s3477_s6  ;;  %v968_v15 = vrot.slane %v954_v0, 1  ;;  %v1252_v62 = vrot.slane %v1240_v50, 1  ;;  %v1251_v41 = vrot.slane %v1239_v8, 1  ;;  %s1967_s6 = sshll.u32 %s272_s0, 8 }
 0x153   : > { %v1065_v28 = vmul.f32 %v2176_v25, %v1062_v58  ;;  %v1254_v21 = vrot.slane %v1241_v33, 1  ;;  %v1257_v40 = vrot.slane %v1243_v52, 1  ;;  %v1063_v35 = vmul.f32 %v2170_v34, %v1062_v58 }
 0x154   : > { %v1067_v60 = vmul.f32 %v2177_v59, %v1062_v58  ;;  %v1256_v11 = vrot.slane %v1242_v56, 1  ;;  %v1076_v61 = vrot.slane %v1064_v46, 2  ;;  %v1355_v8 = vmul.f32 %v2175_v54, %v1350_v44 }
 0x155   : > { %v1078_v0 = vrot.slane %v1065_v28, 2  ;;  %v1356_v33 = vmul.f32 %v2181_v20, %v1350_v44  ;;  %v1354_v52 = vmul.f32 %v3474_v45, %v1350_v44  ;;  %v967_v59 = vsel %vm385_vm0, %v964_v18, %v966_v31 }
 0x156   : > { %v3450_v3 = vpop.permute.xlu1 %1225  ;;  %v3452_v16 = vpop.permute.xlu0 %1223  ;;  %v972_v25 = vsel %vm385_vm0, %v969_v36, %v971_v42  ;;  %v1075_v34 = vrot.slane %v1063_v35, 2  ;;  %v970_v45 = vsel %vm385_vm0, %v968_v15, %v969_v36  ;;  %v1255_v18 = vsel %vm385_vm0, %v1252_v62, %v1254_v21 }
 0x157   : > { %v1253_v42 = vsel %vm385_vm0, %v1251_v41, %v1252_v62  ;;  %v1369_v54 = vrot.slane %v1355_v8, 2  ;;  %v1371_v50 = vrot.slane %v1356_v33, 2  ;;  %v1207_v31 = vadd.f32 %v3438_v63, %v3491_v12 }
 0x158   : > { %v1077_v15 = vsel %vm498_vm1, %v1075_v34, %v1076_v61  ;;  %v977_v36 = vadd.f32 %v3501_v4, %v3432_v1  ;;  %v3579_v4 = vstv %s3522_s9  ;;  %v980_v21 = vadd.f32 %v972_v25, %v3434_v19 }
 0x159   : > { %v3565_v56 = vsel %vm498_vm1, %v1369_v54, %v1371_v50  ;;  %v3599_v25 = vstv %s3537_s10 }
 0x15a   : > { %v3454_v30 = vpop.permute.xlu1 %1007  ;;  %v3456_v47 = vpop.permute.xlu0 %1227  ;;  %v1017_v1 = vadd.f32 %v3440_v13, %v977_v36 }
 0x15e   : > { %v3458_v26 = vpop.permute.xlu1 %1011  ;;  %v3460_v14 = vpop.permute.xlu0 %1009 }
 0x15f   : > { %4070 = vst [vmem:[#allocation23_spill] sm:$0xff] %v3460_v14  ;;  %v1351_v14 = vmul.f32 %v2172_v37, %v1350_v44  ;;  %v1020_v8 = vadd.f32 %v3458_v26, %v980_v21 }
 0x162   : > { %v3468_v55 = vpop.permute.xlu1 %1047  ;;  %v3470_v2 = vpop.permute.xlu0 %1045 }
 0x163   : > { %4071 = vst [vmem:[#allocation26_spill] sm:$0xff] %v3470_v2  ;;  %v1259_v2 = vrot.slane %v1244_v38, 1 }
 0x166   : > { %v3487_v49 = vpop.permute.xlu1 %1051  ;;  %v3489_v24 = vpop.permute.xlu0 %1049 }
 0x167   : > { %4072 = vst [vmem:[#allocation49_spill] sm:$0xff] %v3487_v49  ;;  %4073 = vst [vmem:[#allocation50_spill] sm:$0xff] %v3489_v24  ;;  %v1068_v24 = vmul.f32 %v2178_v10, %v1062_v58  ;;  %v1066_v49 = vmul.f32 %v2179_v9, %v1062_v58  ;;  %v1081_v10 = vrot.slane %v1067_v60, 2  ;;  %v1258_v60 = vsel %vm385_vm0, %v1256_v11, %v1257_v40 }
 0x168   : > { %v1368_v58 = vrot.slane %v1354_v52, 2 }
 0x169   : > { %v1083_v28 = vrot.slane %v1068_v24, 2  ;;  %v1080_v9 = vrot.slane %v1066_v49, 2  ;;  %v1208_v24 = vadd.f32 %v3444_v5, %v1182_v17  ;;  %v1260_v49 = vsel %vm385_vm0, %v1257_v40, %v1259_v2 }
 0x16a   : > { %v3504_v53 = vpop.permute.xlu1 %1295  ;;  %v3506_v27 = vpop.permute.xlu0 %1293  ;;  %v1233_v17 = vadd.f32 %v3446_v6, %v1207_v31  ;;  %v978_v5 = vadd.f32 %v967_v59, %v3430_v7  ;;  %v3568_v46 = vsel %vm498_vm1, %v1368_v58, %v1369_v54  ;;  %v1210_v7 = vadd.f32 %v3448_v23, %v3497_v48  ;;  %v4077_v33 = vld [vmem:[#allocation26_spill] sm:$0xff] }
 0x16b   : > { %4074 = vst [vmem:[#allocation51_spill] sm:$0xff] %v3504_v53  ;;  %4075 = vst [vmem:[#allocation52_spill] sm:$0xff] %v3506_v27  ;;  %v1352_v27 = vmul.f32 %v2174_v39, %v1350_v44  ;;  %v1353_v53 = vmul.f32 %v2180_v43, %v1350_v44  ;;  %v1363_v39 = vrot.slane %v1351_v14, 2  ;;  %v1084_v14 = vsel %vm498_vm1, %v1081_v10, %v1083_v28 }
 0x16c   : > { %v1082_v12 = vsel %vm498_vm1, %v1080_v9, %v1081_v10  ;;  %v1234_v63 = vadd.f32 %v3452_v16, %v1208_v24  ;;  %v1018_v6 = vadd.f32 %v3454_v30, %v978_v5  ;;  %v3576_v16 = vstv %s3520_s8  ;;  %s2081_s8 = sshll.u32 %s2380_s22, 12 }
 0x16d   : > { %v1364_v37 = vrot.slane %v1352_v27, 2  ;;  %v1366_v20 = vrot.slane %v1353_v53, 2  ;;  %v1079_v53 = vsel %vm498_vm1, %v1076_v61, %v1078_v0  ;;  %v3560_v27 = vstv %s3515_s26  ;;  %s3804_s26 = scalar_lea.vmem [#allocation10], %s1967_s6 }
 0x16e   : > { %v3511_v22 = vpop.permute.xlu1 %1299  ;;  %v3513_v57 = vpop.permute.xlu0 %1297  ;;  %v1209_v44 = vadd.f32 %v3442_v32, %v3493_v29  ;;  %v979_v48 = vadd.f32 %v970_v45, %v3436_v51  ;;  %v1236_v30 = vadd.f32 %v3456_v47, %v1210_v7  ;;  %v1058_v35 = vadd.f32 %v3468_v55, %v1018_v6  ;;  %v4076_v32 = vld [vmem:[#allocation23_spill] sm:$0xff]  ;;  %v4080_v34 = vld [vmem:[#allocation49_spill] sm:$0xff]  ;;  %v4081_v28 = vld [vmem:[#allocation50_spill] sm:$0xff]  ;;  %s1852_s9 = sshll.u32 %s3804_s26, 4  ;;  %s3905_s9 = int_to_ptr.vmem [resolvable:$true] %s1852_s9 }
 0x16f   : > { %v1367_v40 = vsel %vm498_vm1, %v1364_v37, %v1366_v20  ;;  %v1365_v2 = vsel %vm498_vm1, %v1363_v39, %v1364_v37  ;;  %v1266_v11 = vadd.f32 %v1255_v18, %v1234_v63  ;;  %v1265_v61 = vadd.f32 %v1253_v42, %v1233_v17 }
 0x170   : > { %v1235_v13 = vadd.f32 %v3450_v3, %v1209_v44  ;;  %v1019_v29 = vadd.f32 %v4076_v32, %v979_v48  ;;  %v1057_v19 = vadd.f32 %v4077_v33, %v1017_v1  ;;  %v3602_v55 = vstv %s3539_s13  ;;  %v4085_v32 = vld [vmem:[#allocation24_spill] sm:$0xff]  ;;  %s3903_s13 = scalar_lea.hbm %s3975_s5, %s2081_s8 }
 0x171   : > { %v1060_v10 = vadd.f32 %v4080_v34, %v1020_v8  ;;  %v3607_v9 = vstv %s3548_s11  ;;  %v3610_v37 = vstv %s3550_s14  ;;  %v1268_v20 = vadd.f32 %v1260_v49, %v1236_v30  ;;  %s3929_s11 = scalar_lea.sflag [#allocation3], %s272_s0  ;;  %s2242_s14 = scalar_lea.vmem %s3905_s9, 4096 }
 0x172   : > { %v3524_v38 = vpop.permute.xlu1 %1335  ;;  %v3526_v43 = vpop.permute.xlu0 %1333  ;;  %v4078_v52 = vld [vmem:[#allocation51_spill] sm:$0xff]  ;;  %v4079_v59 = vld [vmem:[#allocation52_spill] sm:$0xff]  ;;  %v1059_v3 = vadd.f32 %v4081_v28, %v1019_v29  ;;  %v1090_v42 = vadd.f32 %v1079_v53, %v1058_v35  ;;  %v1267_v54 = vadd.f32 %v1258_v60, %v1235_v13  ;;  %v1089_v50 = vadd.f32 %v1077_v15, %v1057_v19  ;;  %v4084_v13 = vld [vmem:[#allocation18_spill] sm:$0xff]  ;;  %p2243_p13 = scmp.ne.s32.totalorder %s3905_s9, %s2242_s14 }
 0x173   : > { %v1306_v51 = vadd.f32 %v4078_v52, %v1266_v11  ;;  %v1305_v47 = vadd.f32 %v4079_v59, %v1265_v61  ;;  %v3615_v58 = vstv %s3562_s30  ;;  %v3618_v31 = vstv %s3570_s12  ;;  %v4082_v35 = vld [vmem:[#allocation16_spill] sm:$0xff]  ;;  %v4083_v61 = vld [vmem:[#allocation17_spill] sm:$0xff]  ;;  %v4086_v19 = vld [vmem:[#allocation19_spill] sm:$0xff]  ;;  %s2326_s30 = smov [#allocation10]  }
 0x174   : > { %v1308_v24 = vadd.f32 %v3511_v22, %v1268_v20  ;;  %v3622_v63 = vstv %s3581_s15  ;;  %v3625_v5 = vstv %s3583_s16  ;;  %v1307_v49 = vadd.f32 %v3513_v57, %v1267_v54  ;;  %p2244_p3 = pnand %p2243_p13, %p4114_p1  ;;  %s2246_s12 = sshll.u32 %s2326_s30, 4  ;;  %s2247_s12 = int_to_ptr.vmem [resolvable:$false] %s2246_s12 }
 0x175   : > { %v1346_v45 = vadd.f32 %v3524_v38, %v1306_v51  ;;  %v1345_v18 = vadd.f32 %v3526_v43, %v1305_v47  ;;  %v1092_v36 = vadd.f32 %v1084_v14, %v1060_v10  ;;  %v1091_v43 = vadd.f32 %v1082_v12, %v1059_v3  ;;  %v4087_v51 = vld [vmem:[#allocation20_spill] sm:$0xff]  ;;  %v4088_v47 = vld [vmem:[#allocation21_spill] sm:$0xff]  ;;  %v4089_v10 = vld [vmem:[#allocation22_spill] sm:$0xff]  ;;  %s2248_s15 = scalar_lea.vmem %s2247_s12, 8192  ;;  %p2249_p9 = scmp.lt.s32.totalorder %s3905_s9, %s2247_s12 }
 0x176   : > { %v3541_v41 = vpop.permute.xlu1 %1339  ;;  %v3543_v62 = vpop.permute.xlu0 %1337  ;;  %p2245_p2 = pneg %p2244_p3  ;;  %p2250_p6 = scmp.lt.s32.totalorder %s2248_s15, %s2242_s14 }
 0x177   : > { %v1348_v60 = vadd.f32 %v3541_v41, %v1308_v24  ;;  %v1378_v6 = vadd.f32 %v1367_v40, %v1346_v45  ;;  %v1377_v1 = vadd.f32 %v1365_v2, %v1345_v18  ;;  %v1347_v44 = vadd.f32 %v3543_v62, %v1307_v49  ;;  %v4090_v24 = vld [vmem:[#allocation27_spill] sm:$0xff]  ;;  %v4091_v49 = vld [vmem:[#allocation28_spill] sm:$0xff] }
 0x178   : > { %p2251_p4 = por %p2250_p6, %p2249_p9 }
 0x17a   : > { %v1120_v23 = vpop.permute.xlu1 %1119  ;;  %v1118_v0 = vpop.permute.xlu0 %1117  ;;  %p2252_p7 = pnand %p2251_p4, %p2245_p2 }
 0x17b   : > { %v1130_v17 = vadd.f32 %v1120_v23, %v1090_v42  ;;  %v1129_v38 = vadd.f32 %v1118_v0, %v1089_v50 }
 0x17e   : > { %v1124_v26 = vpop.permute.xlu1 %1123  ;;  %v1122_v39 = vpop.permute.xlu0 %1121 }
 0x17f   : > { %v1132_v22 = vadd.f32 %v1124_v26, %v1092_v36  ;;  %v1131_v21 = vadd.f32 %v1122_v39, %v1091_v43  ;;  %v4092_v36 = vld [vmem:[#allocation29_spill] sm:$0xff] }
 0x182   : > { %v1160_v53 = vpop.permute.xlu1 %1159  ;;  %v1158_v7 = vpop.permute.xlu0 %1157 }
 0x183   : > { %v1170_v15 = vadd.f32 %v1160_v53, %v1130_v17  ;;  %v1169_v48 = vadd.f32 %v1158_v7, %v1129_v38  ;;  %v4093_v53 = vld [vmem:[#allocation30_spill] sm:$0xff] }
 0x185   : > { %v1486_v23 = vmul.f32 %v3560_v27, %v1170_v15  ;;  %v1533_v30 = vmul.f32 %v3576_v16, %v1170_v15  ;;  %v1580_v57 = vmul.f32 %v3579_v4, %v1170_v15  ;;  %v1627_v14 = vmul.f32 %v3599_v25, %v1170_v15 }
 0x186   : > { %v1674_v41 = vmul.f32 %v3602_v55, %v1170_v15  ;;  %v1721_v12 = vmul.f32 %v3607_v9, %v1170_v15  ;;  %v1768_v62 = vmul.f32 %v3610_v37, %v1170_v15  ;;  %v1815_v40 = vmul.f32 %v3615_v58, %v1170_v15  ;;  %v1164_v2 = vpop.permute.xlu1 %1163  ;;  %v1162_v33 = vpop.permute.xlu0 %1161 }
 0x187   : > { %v3643_v11 = vadd.f32 %v1486_v23, %v4082_v35  ;;  %v3646_v0 = vadd.f32 %v1533_v30, %v4083_v61  ;;  %v3649_v8 = vadd.f32 %v1580_v57, %v4084_v13  ;;  %v3652_v29 = vadd.f32 %v1627_v14, %v4085_v32  ;;  %v4094_v23 = vld [vmem:[#allocation31_spill] sm:$0xff]  ;;  %v4095_v57 = vld [vmem:[#allocation32_spill] sm:$0xff] }
 0x188   : > { %v3655_v52 = vadd.f32 %v1674_v41, %v4086_v19  ;;  %v3658_v59 = vadd.f32 %v1721_v12, %v4087_v51  ;;  %v3661_v34 = vadd.f32 %v1768_v62, %v4088_v47  ;;  %v3664_v28 = vadd.f32 %v1815_v40, %v4089_v10  ;;  %v4097_v12 = vld [vmem:[#allocation34_spill] sm:$0xff] }
 0x189   : > { %v1485_v3 = vmul.f32 %v3560_v27, %v1169_v48  ;;  %v1532_v26 = vmul.f32 %v3576_v16, %v1169_v48  ;;  %v1579_v20 = vmul.f32 %v3579_v4, %v1169_v48  ;;  %v1626_v45 = vmul.f32 %v3599_v25, %v1169_v48 }
 0x18a   : > { %v1673_v18 = vmul.f32 %v3602_v55, %v1169_v48  ;;  %v1720_v42 = vmul.f32 %v3607_v9, %v1169_v48  ;;  %v1767_v39 = vmul.f32 %v3610_v37, %v1169_v48  ;;  %v1814_v54 = vmul.f32 %v3615_v58, %v1169_v48  ;;  %v1408_v50 = vpop.permute.xlu1 %1407  ;;  %v1406_v7 = vpop.permute.xlu0 %1405  ;;  %v4096_v48 = vld [vmem:[#allocation33_spill] sm:$0xff] }
 0x18b   : > { %v3675_v17 = vadd.f32 %v1485_v3, %v4090_v24  ;;  %v3678_v38 = vadd.f32 %v1532_v26, %v4091_v49  ;;  %v3681_v43 = vadd.f32 %v1579_v20, %v4092_v36  ;;  %v3684_v15 = vadd.f32 %v1626_v45, %v4093_v53  ;;  %v4100_v45 = vld [vmem:[#allocation36_spill] sm:$0xff]  ;;  %v4103_v24 = vld [vmem:[#allocation39_spill] sm:$0xff] }
 0x18c   : > { %v3687_v30 = vadd.f32 %v1673_v18, %v4094_v23  ;;  %v3690_v14 = vadd.f32 %v1720_v42, %v4095_v57  ;;  %v3693_v41 = vadd.f32 %v1767_v39, %v4096_v48  ;;  %v3696_v62 = vadd.f32 %v1814_v54, %v4097_v12  ;;  %v4101_v42 = vld [vmem:[#allocation37_spill] sm:$0xff]  ;;  %v4102_v54 = vld [vmem:[#allocation38_spill] sm:$0xff]  ;;  %v4104_v36 = vld [vmem:[#allocation40_spill] sm:$0xff] }
 0x18d   : > { %v1172_v40 = vadd.f32 %v1164_v2, %v1132_v22  ;;  %v1380_v35 = vadd.f32 %v3565_v56, %v1348_v60  ;;  %v3700_v61 = vstv %s3634_s17  ;;  %v3703_v13 = vstv %s3636_s1 }
 0x18e   : > { %v1171_v32 = vadd.f32 %v1162_v33, %v1131_v21  ;;  %v1418_v19 = vadd.f32 %v1408_v50, %v1378_v6  ;;  %v1417_v51 = vadd.f32 %v1406_v7, %v1377_v1  ;;  %v1412_v47 = vpop.permute.xlu1 %1411  ;;  %v1379_v10 = vadd.f32 %v3568_v46, %v1347_v44  ;;  %v1410_v60 = vpop.permute.xlu0 %1409  ;;  %v4098_v21 = vld [vmem:[#allocation25_spill] sm:$0xff]  ;;  %v4099_v33 = vld [vmem:[#allocation35_spill] sm:$0xff] }
 0x18f   : > { %v1488_v3 = vmul.f32 %v3560_v27, %v1172_v40  ;;  %v1535_v26 = vmul.f32 %v3576_v16, %v1172_v40  ;;  %v1582_v22 = vmul.f32 %v3579_v4, %v1172_v40  ;;  %v1629_v56 = vmul.f32 %v3599_v25, %v1172_v40  ;;  %v4105_v7 = vld [vmem:[#allocation15_spill] sm:$0xff] }
 0x190   : > { %v1676_v6 = vmul.f32 %v3602_v55, %v1172_v40  ;;  %v1723_v1 = vmul.f32 %v3607_v9, %v1172_v40  ;;  %v1770_v46 = vmul.f32 %v3610_v37, %v1172_v40  ;;  %v1817_v44 = vmul.f32 %v3615_v58, %v1172_v40 }
 0x191   : > { %v3721_v2 = vadd.f32 %v1488_v3, %v4098_v21  ;;  %v3724_v20 = vadd.f32 %v1535_v26, %v4099_v33  ;;  %v3727_v18 = vadd.f32 %v1582_v22, %v4100_v45  ;;  %v3730_v39 = vadd.f32 %v1629_v56, %v4101_v42  ;;  %v4110_v21 = vld [vmem:[#allocation45_spill] sm:$0xff]  ;;  %v4111_v33 = vld [vmem:[#allocation46_spill] sm:$0xff]  ;;  %v4113_v42 = vld [vmem:[#allocation48_spill] sm:$0xff] }
 0x192   : > { %v3733_v50 = vadd.f32 %v1676_v6, %v4102_v54  ;;  %v3736_v49 = vadd.f32 %v1723_v1, %v4103_v24  ;;  %v3739_v53 = vadd.f32 %v1770_v46, %v4104_v36  ;;  %v3742_v23 = vadd.f32 %v1817_v44, %v4105_v7  ;;  %v1448_v6 = vpop.permute.xlu1 %1447 }
 0x193   : > { %v1487_v57 = vmul.f32 %v3560_v27, %v1171_v32  ;;  %v1534_v48 = vmul.f32 %v3576_v16, %v1171_v32  ;;  %v1581_v12 = vmul.f32 %v3579_v4, %v1171_v32  ;;  %v1628_v40 = vmul.f32 %v3599_v25, %v1171_v32  ;;  %v4106_v27 = vld [vmem:[#allocation41_spill] sm:$0xff]  ;;  %v4107_v4 = vld [vmem:[#allocation42_spill] sm:$0xff]  ;;  %v4108_v25 = vld [vmem:[#allocation43_spill] sm:$0xff] }
 0x194   : > { %v1675_v3 = vmul.f32 %v3602_v55, %v1171_v32  ;;  %v1722_v26 = vmul.f32 %v3607_v9, %v1171_v32  ;;  %v1769_v22 = vmul.f32 %v3610_v37, %v1171_v32  ;;  %v1816_v56 = vmul.f32 %v3615_v58, %v1171_v32  ;;  %v4109_v55 = vld [vmem:[#allocation44_spill] sm:$0xff]  ;;  %v1446_v9 = vpop.permute.xlu0 %1445  ;;  %v4112_v32 = vld [vmem:[#allocation47_spill] sm:$0xff] }
 0x195   : > { %v3754_v16 = vadd.f32 %v1487_v57, %v4106_v27  ;;  %v3757_v1 = vadd.f32 %v1534_v48, %v4107_v4  ;;  %v3760_v46 = vadd.f32 %v1581_v12, %v4108_v25  ;;  %v3763_v44 = vadd.f32 %v1628_v40, %v4109_v55 }
 0x196   : > { %v3766_v37 = vadd.f32 %v1675_v3, %v4110_v21  ;;  %v3769_v58 = vadd.f32 %v1722_v26, %v4111_v33  ;;  %v3772_v45 = vadd.f32 %v1769_v22, %v4112_v32  ;;  %v3775_v54 = vadd.f32 %v1816_v56, %v4113_v42  ;;  %v1452_v21 = vpop.permute.xlu1 %1451 }
 0x197   : > { %v3778_v24 = vstv %s3706_s23  ;;  %v3781_v36 = vstv %s3712_s25  ;;  %v3784_v7 = vstv %s3714_s7  ;;  %v1458_v57 = vadd.f32 %v1448_v6, %v1418_v19 }
 0x198   : > { %v1420_v48 = vadd.f32 %v1412_v47, %v1380_v35  ;;  %v1419_v12 = vadd.f32 %v1410_v60, %v1379_v10  ;;  %v1457_v40 = vadd.f32 %v1446_v9, %v1417_v51 }
 0x199   : > { %v1496_v3 = vmul.f32 %v3618_v31, %v1458_v57  ;;  %v1543_v26 = vmul.f32 %v3622_v63, %v1458_v57  ;;  %v1590_v22 = vmul.f32 %v3625_v5, %v1458_v57  ;;  %v1637_v56 = vmul.f32 %v3700_v61, %v1458_v57 }
 0x19a   : > { %v1684_v27 = vmul.f32 %v3703_v13, %v1458_v57  ;;  %v1731_v4 = vmul.f32 %v3778_v24, %v1458_v57  ;;  %v1778_v25 = vmul.f32 %v3781_v36, %v1458_v57  ;;  %v1825_v19 = vmul.f32 %v3784_v7, %v1458_v57 }
 0x19b   : > { %v1500_v35 = vadd.f32 %v1496_v3, %v3643_v11  ;;  %v1547_v51 = vadd.f32 %v1543_v26, %v3646_v0  ;;  %v1594_v47 = vadd.f32 %v1590_v22, %v3649_v8  ;;  %v1641_v10 = vadd.f32 %v1637_v56, %v3652_v29  ;;  %v1450_v3 = vpop.permute.xlu0 %1449 }
 0x19c   : > { %v1688_v60 = vadd.f32 %v1684_v27, %v3655_v52  ;;  %v1735_v6 = vadd.f32 %v1731_v4, %v3658_v59  ;;  %v1782_v55 = vadd.f32 %v1778_v25, %v3661_v34  ;;  %v1829_v9 = vadd.f32 %v1825_v19, %v3664_v28 }
 0x19d   : > { %1505 = vst.msk [vmem:[%s3804_s26 + $0x8] sm:$0xff] %vm1503_vm2, %v1500_v35  ;;  %2017 = vst.msk [vmem:[%s3804_s26 + $0x18] sm:$0xff] %vm1503_vm2, %v1547_v51  ;;  %v1495_v11 = vmul.f32 %v3618_v31, %v1457_v40  ;;  %v1542_v0 = vmul.f32 %v3622_v63, %v1457_v40  ;;  %v1589_v8 = vmul.f32 %v3625_v5, %v1457_v40 }
 0x19e   : > { %2026 = vst.msk [vmem:[%s3804_s26 + $0x28] sm:$0xff] %vm1503_vm2, %v1594_v47  ;;  %2035 = vst.msk [vmem:[%s3804_s26 + $0x38] sm:$0xff] %vm1503_vm2, %v1641_v10  ;;  %v1636_v29 = vmul.f32 %v3700_v61, %v1457_v40  ;;  %v1683_v52 = vmul.f32 %v3703_v13, %v1457_v40  ;;  %v1730_v59 = vmul.f32 %v3778_v24, %v1457_v40 }
 0x19f   : > { %2044 = vst.msk [vmem:[%s3804_s26 + $0x48] sm:$0xff] %vm1503_vm2, %v1688_v60  ;;  %2053 = vst.msk [vmem:[%s3804_s26 + $0x58] sm:$0xff] %vm1503_vm2, %v1735_v6  ;;  %v1777_v34 = vmul.f32 %v3781_v36, %v1457_v40  ;;  %v1824_v28 = vmul.f32 %v3784_v7, %v1457_v40  ;;  %v1499_v33 = vadd.f32 %v1495_v11, %v3675_v17 }
 0x1a0   : > { %2062 = vst.msk [vmem:[%s3804_s26 + $0x68] sm:$0xff] %vm1503_vm2, %v1782_v55  ;;  %2071 = vst.msk [vmem:[%s3804_s26 + $0x78] sm:$0xff] %vm1503_vm2, %v1829_v9  ;;  %v1546_v32 = vadd.f32 %v1542_v0, %v3678_v38  ;;  %v1593_v42 = vadd.f32 %v1589_v8, %v3681_v43  ;;  %v1640_v57 = vadd.f32 %v1636_v29, %v3684_v15 }
 0x1a1   : > { %v1687_v26 = vadd.f32 %v1683_v52, %v3687_v30  ;;  %v1734_v22 = vadd.f32 %v1730_v59, %v3690_v14  ;;  %v1781_v40 = vadd.f32 %v1777_v34, %v3693_v41  ;;  %v1828_v56 = vadd.f32 %v1824_v28, %v3696_v62  ;;  %1504 = vst.msk [vmem:[%s3804_s26] sm:$0xff] %vm1503_vm2, %v1499_v33 }
 0x1a2   : > { %2016 = vst.msk [vmem:[%s3804_s26 + $0x10] sm:$0xff] %vm1503_vm2, %v1546_v32  ;;  %2025 = vst.msk [vmem:[%s3804_s26 + $0x20] sm:$0xff] %vm1503_vm2, %v1593_v42  ;;  %v1460_v17 = vadd.f32 %v1452_v21, %v1420_v48  ;;  %v1459_v38 = vadd.f32 %v1450_v3, %v1419_v12 }
 0x1a3   : > { %2034 = vst.msk [vmem:[%s3804_s26 + $0x30] sm:$0xff] %vm1503_vm2, %v1640_v57  ;;  %2043 = vst.msk [vmem:[%s3804_s26 + $0x40] sm:$0xff] %vm1503_vm2, %v1687_v26 }
 0x1a4   : > { %2052 = vst.msk [vmem:[%s3804_s26 + $0x50] sm:$0xff] %vm1503_vm2, %v1734_v22  ;;  %2061 = vst.msk [vmem:[%s3804_s26 + $0x60] sm:$0xff] %vm1503_vm2, %v1781_v40  ;;  %v1498_v43 = vmul.f32 %v3618_v31, %v1460_v17  ;;  %v1545_v15 = vmul.f32 %v3622_v63, %v1460_v17  ;;  %v1592_v30 = vmul.f32 %v3625_v5, %v1460_v17 }
 0x1a5   : > { %2070 = vst.msk [vmem:[%s3804_s26 + $0x70] sm:$0xff] %vm1503_vm2, %v1828_v56  ;;  %v1639_v14 = vmul.f32 %v3700_v61, %v1460_v17  ;;  %v1686_v41 = vmul.f32 %v3703_v13, %v1460_v17  ;;  %v1733_v62 = vmul.f32 %v3778_v24, %v1460_v17  ;;  %v1780_v48 = vmul.f32 %v3781_v36, %v1460_v17 }
 0x1a6   : > { %v1827_v12 = vmul.f32 %v3784_v7, %v1460_v17  ;;  %v1502_v27 = vadd.f32 %v1498_v43, %v3721_v2  ;;  %v1549_v4 = vadd.f32 %v1545_v15, %v3724_v20  ;;  %v1596_v25 = vadd.f32 %v1592_v30, %v3727_v18 }
 0x1a7   : > { %v1643_v19 = vadd.f32 %v1639_v14, %v3730_v39  ;;  %v1690_v35 = vadd.f32 %v1686_v41, %v3733_v50  ;;  %v1737_v51 = vadd.f32 %v1733_v62, %v3736_v49  ;;  %v1784_v47 = vadd.f32 %v1780_v48, %v3739_v53 }
 0x1a8   : > { %v1831_v10 = vadd.f32 %v1827_v12, %v3742_v23  ;;  %1507 = vst.msk [vmem:[%s3804_s26 + $0x88] sm:$0xff] %vm1503_vm2, %v1502_v27  ;;  %2019 = vst.msk [vmem:[%s3804_s26 + $0x98] sm:$0xff] %vm1503_vm2, %v1549_v4  ;;  %v1497_v2 = vmul.f32 %v3618_v31, %v1459_v38  ;;  %v1544_v20 = vmul.f32 %v3622_v63, %v1459_v38 }
 0x1a9   : > { %2028 = vst.msk [vmem:[%s3804_s26 + $0xa8] sm:$0xff] %vm1503_vm2, %v1596_v25  ;;  %2037 = vst.msk [vmem:[%s3804_s26 + $0xb8] sm:$0xff] %vm1503_vm2, %v1643_v19  ;;  %v1591_v18 = vmul.f32 %v3625_v5, %v1459_v38  ;;  %v1638_v39 = vmul.f32 %v3700_v61, %v1459_v38  ;;  %v1685_v50 = vmul.f32 %v3703_v13, %v1459_v38 }
 0x1aa   : > { %2046 = vst.msk [vmem:[%s3804_s26 + $0xc8] sm:$0xff] %vm1503_vm2, %v1690_v35  ;;  %2055 = vst.msk [vmem:[%s3804_s26 + $0xd8] sm:$0xff] %vm1503_vm2, %v1737_v51  ;;  %v1732_v31 = vmul.f32 %v3778_v24, %v1459_v38  ;;  %v1779_v63 = vmul.f32 %v3781_v36, %v1459_v38  ;;  %v1826_v5 = vmul.f32 %v3784_v7, %v1459_v38 }
 0x1ab   : > { %2064 = vst.msk [vmem:[%s3804_s26 + $0xe8] sm:$0xff] %vm1503_vm2, %v1784_v47  ;;  %2073 = vst.msk [vmem:[%s3804_s26 + $0xf8] sm:$0xff] %vm1503_vm2, %v1831_v10  ;;  %v1501_v61 = vadd.f32 %v1497_v2, %v3754_v16  ;;  %v1548_v49 = vadd.f32 %v1544_v20, %v3757_v1  ;;  %v1595_v53 = vadd.f32 %v1591_v18, %v3760_v46 }
 0x1ac   : > { %v1642_v13 = vadd.f32 %v1638_v39, %v3763_v44  ;;  %v1689_v23 = vadd.f32 %v1685_v50, %v3766_v37  ;;  %v1736_v16 = vadd.f32 %v1732_v31, %v3769_v58  ;;  %v1783_v1 = vadd.f32 %v1779_v63, %v3772_v45 }
 0x1ad   : > { %v1830_v46 = vadd.f32 %v1826_v5, %v3775_v54  ;;  %1506 = vst.msk [vmem:[%s3804_s26 + $0x80] sm:$0xff] %vm1503_vm2, %v1501_v61  ;;  %2018 = vst.msk [vmem:[%s3804_s26 + $0x90] sm:$0xff] %vm1503_vm2, %v1548_v49 }
 0x1ae   : > { %2027 = vst.msk [vmem:[%s3804_s26 + $0xa0] sm:$0xff] %vm1503_vm2, %v1595_v53  ;;  %2036 = vst.msk [vmem:[%s3804_s26 + $0xb0] sm:$0xff] %vm1503_vm2, %v1642_v13 }
 0x1af   : > { %2045 = vst.msk [vmem:[%s3804_s26 + $0xc0] sm:$0xff] %vm1503_vm2, %v1689_v23  ;;  %2054 = vst.msk [vmem:[%s3804_s26 + $0xd0] sm:$0xff] %vm1503_vm2, %v1736_v16 }
 0x1b0   : > { %2063 = vst.msk [vmem:[%s3804_s26 + $0xe0] sm:$0xff] %vm1503_vm2, %v1783_v1  ;;  %2072 = vst.msk [vmem:[%s3804_s26 + $0xf0] sm:$0xff] %vm1503_vm2, %v1830_v46 }
 0x1b1   : > { %2255 = shalt.err (!%p2252_p7)
}
 0x1b2   : > { %s2256_s16 = scalar_lea.hbm %s3903_s13, 4096  ;;  %s2260_s23 = scalar_lea.hbm %s3975_s5, 8192 }
 0x1b3   : > { %p2257_p8 = scmp.ne.s32.totalorder %s3903_s13, %s2256_s16  ;;  %p2261_p5 = scmp.lt.u32.totalorder %s3903_s13, %s3975_s5 }
 0x1b4   : > { %p2262_p10 = scmp.lt.u32.totalorder %s2260_s23, %s2256_s16  ;;  %p2264_p13 = scmp.lt.u32.totalorder %s2256_s16, %s3903_s13 }
 0x1b5   : > { %p2258_p0 = pnand %p2257_p8, %p4114_p1 }
 0x1b6   : > { %p2263_p12 = por %p2262_p10, %p2261_p5 }
 0x1b7   : > { %p2259_p11 = pneg %p2258_p0 }
 0x1b8   : > { %p2265_p3 = por %p2264_p13, %p2263_p12 }
 0x1ba   : > { %p2266_p2 = pnand %p2265_p3, %p2259_p11 }
 0x1bc   : > { %2269 = shalt.err (!%p2266_p2)
}
 0x1bd   : > { %s2327_s0 = smov 128   ;;  %s2328_s6 = smov 8  }
 0x1be   : > { %2099 = dma.vmem_to_hbm [thread:$0]  (%p4114_p1), %s3905_s9, 4096, %s3903_s13, %s3929_s11, %s2327_s0, %s2327_s0, %s2328_s6  }
 0x1bf PF: > { %p2126_p9 = scmp.ge.s32.totalorder %s2316_s21, 2  ;;  %s1867_s26 = sand.u32 1, %s2304_s18  }
 0x1c0   : > { %p4115_p6 = scmp.ne.s32.totalorder %s3996_s29, 0  ;;  %s1868_s8 = scalar_lea.sflag [#allocation3], %s1867_s26 }
 0x1c2   : > { %p2115_p4 = pnand %p2126_p9, %p4115_p6 }
 0x1c4   : > { %2299 = dma.done.wait (!%p2115_p4), %s1868_s8, 4096  }
 0x1c5   : > { %2301 = vsyncadd (!%p2115_p4), %s1868_s8, 4294963200  ;;  %p18_p7 = scmp.ge.s32.totalorder %s2384_s24, 4   ;;  %s4116_s18 = smov %s2308_s19 }
 0x1c6   : > { %s4117_s19 = smov %s2312_s20  ;;  %s4118_s20 = smov %s2395_s27 }
 0x1c7   : > { %s4119_s21 = smov %s2384_s24  ;;  %20 = sbr.rel (!%p18_p7) target bundleno = 9 (0x9), region = 99 }
 0x1ce   :  { %1873 = vsyncpa [#allocation3], 1 }
 0x1cf   :  { %1875 = vsyncpa [#allocation3 + $0x1], 1 }
 0x1d0   :  { %1876 = vsyncpa [#allocation4], 1 }
 0x1d1   :  { %1878 = vsyncpa [#allocation4 + $0x1], 1 }
 0x1d2   :  { %1879 = vsyncpa [#allocation6], 1 }
 0x1d3   :  { %1880 = vsyncpa [#allocation9], 1 }

</bundles_post_ra>
